<compile_context>
chip_gen: v5e
topology: v5e:2x2
jax: 0.10.0
libtpu: 0.0.40
codegen_flags: <defaults>
</compile_context>

<pallas_src>
import math

import jax
import jax.numpy as jnp
import numpy as np
from jax.experimental import pallas as pl
from jax.experimental.pallas import tpu as pltpu

ANCHORS = [[11, 12, 14, 32, 35, 24],
           [32, 61, 72, 56, 62, 141],
           [138, 109, 165, 243, 380, 334]]
STRIDES = [8.0, 16.0, 32.0]


def _round_up(x, m):
    return ((x + m - 1) // m) * m


# ----------------------------------------------------------------------------
# Fused Pallas kernel: 1x1 conv (MXU matmul) + bias + sigmoid + box decode
# ----------------------------------------------------------------------------
def _detect_kernel(lay_ref,   # (num_tiles,) int32 scalar prefetch (used by index maps)
                   x_ref,     # (TM, cpad)     NHWC-flattened input rows (zero-padded channels)
                   w_ref,     # (cpad, CPOUT)  this tile's layer 1x1 conv weight (zero-padded)
                   b_ref,     # (1, CPOUT)     bias
                   sl_ref,    # (1, CPOUT)     linear decode scale   (2*stride on xy, 1 on conf)
                   sq_ref,    # (1, CPOUT)     quadratic decode scale (4*anchor*stride on wh)
                   mx_ref,    # (1, CPOUT)     1.0 on x columns of every anchor group
                   my_ref,    # (1, CPOUT)     1.0 on y columns of every anchor group
                   xy_ref,    # (TM, 2)        per-row ((gx-0.5)*stride, (gy-0.5)*stride)
                   o_ref):    # (TM, CPOUT)
    del lay_ref
    logits = jnp.dot(x_ref[...], w_ref[...],
                     preferred_element_type=jnp.float32) + b_ref[...]
    s = jax.nn.sigmoid(logits)                      # EUP (free slot)
    # select-free decode: s*scale_lin + s*s*scale_quad
    dec = s * (sl_ref[...] + s * sq_ref[...])
    # additive xy offsets broadcast onto the x / y columns only
    off = xy_ref[:, 0:1] * mx_ref[...] + xy_ref[:, 1:2] * my_ref[...]
    o_ref[...] = dec + off


def _detect_pallas(x_pad, layer_ids, xyoff, w_all, b_all, sl_all, sq_all,
                   mask_x, mask_y, *, tm):
    rows_pad, cpad = x_pad.shape
    cpout = w_all.shape[2]
    num_tiles = rows_pad // tm

    per_layer = lambda t, lay: (lay[t], 0, 0)   # dynamic layer pick via SMEM scalar
    row_tile = lambda t, lay: (t, 0)
    const2d = lambda t, lay: (0, 0)

    # Explicit, generation-safe VMEM ceiling (usage here is well under 1 MiB;
    # 32 MiB fits the scoped limits of v5e/v6e/v7x).
    vmem_limit = 32 * 1024 * 1024

    return pl.pallas_call(
        _detect_kernel,
        out_shape=jax.ShapeDtypeStruct((rows_pad, cpout), jnp.float32),
        grid_spec=pltpu.PrefetchScalarGridSpec(
            num_scalar_prefetch=1,
            grid=(num_tiles,),
            in_specs=[
                pl.BlockSpec((tm, cpad), row_tile),            # x rows
                pl.BlockSpec((None, cpad, cpout), per_layer),  # weight
                pl.BlockSpec((None, 1, cpout), per_layer),     # bias
                pl.BlockSpec((None, 1, cpout), per_layer),     # scale_lin
                pl.BlockSpec((None, 1, cpout), per_layer),     # scale_quad
                pl.BlockSpec((1, cpout), const2d),             # x-column mask
                pl.BlockSpec((1, cpout), const2d),             # y-column mask
                pl.BlockSpec((tm, 2), row_tile),               # per-row xy offsets
            ],
            out_specs=pl.BlockSpec((tm, cpout), row_tile),
        ),
        compiler_params=pltpu.CompilerParams(
            dimension_semantics=("parallel",),
            vmem_limit_bytes=vmem_limit),
    )(layer_ids, x_pad, w_all, b_all, sl_all, sq_all, mask_x, mask_y, xyoff)


# ----------------------------------------------------------------------------
# Wrapper: params, cached decode constants / tile schedule, reshapes
# ----------------------------------------------------------------------------
class DetectPallas:
    TM = 256  # row tile (big blocks -> few grid steps; still >=2 tiles for v7x)

    def __init__(self, filters, num_class, key):
        self.num_class = num_class
        self.num_layer = len(ANCHORS)
        self.num_output = num_class + 5
        self.num_anchor = len(ANCHORS[0]) // 2
        self.filters = tuple(int(f) for f in filters)
        self.anchors_np = np.asarray(ANCHORS, np.float32).reshape(
            self.num_layer, self.num_anchor, 2)
        self.strides = [float(s) for s in STRIDES]

        na, no = self.num_anchor, self.num_output
        self.cout = na * no
        self.cpout = _round_up(self.cout, 128)          # lane-dense output
        self.cpad = _round_up(max(self.filters), 8)     # common padded cin

        # ---- conv params (match nn.Conv2d(cin, na*no, 1) default init) ----
        self.weights, self.biases = [], []
        for cin in self.filters:
            key, kw, kb = jax.random.split(key, 3)
            bound = 1.0 / math.sqrt(cin)
            self.weights.append(
                jax.random.uniform(kw, (cin, self.cout), jnp.float32, -bound, bound))
            self.biases.append(
                jax.random.uniform(kb, (self.cout,), jnp.float32, -bound, bound))

        # ---- padded / stacked params + decode constants (built ONCE) ----
        w_all = np.zeros((self.num_layer, self.cpad, self.cpout), np.float32)
        b_all = np.zeros((self.num_layer, 1, self.cpout), np.float32)
        sl_all = np.zeros((self.num_layer, 1, self.cpout), np.float32)
        sq_all = np.zeros((self.num_layer, 1, self.cpout), np.float32)
        mask_x = np.zeros((1, self.cpout), np.float32)
        mask_y = np.zeros((1, self.cpout), np.float32)
        for i, cin in enumerate(self.filters):
            w_all[i, :cin, :self.cout] = np.asarray(self.weights[i])
            b_all[i, 0, :self.cout] = np.asarray(self.biases[i])
            s = self.strides[i]
            for a in range(na):
                base = a * no
                sl_all[i, 0, base + 0] = 2.0 * s
                sl_all[i, 0, base + 1] = 2.0 * s
                sl_all[i, 0, base + 4: base + no] = 1.0
                sq_all[i, 0, base + 2] = 4.0 * float(self.anchors_np[i, a, 0]) * s
                sq_all[i, 0, base + 3] = 4.0 * float(self.anchors_np[i, a, 1]) * s
                mask_x[0, base + 0] = 1.0
                mask_y[0, base + 1] = 1.0
        self.w_all = jnp.asarray(w_all)
        self.b_all = jnp.asarray(b_all)
        self.sl_all = jnp.asarray(sl_all)
        self.sq_all = jnp.asarray(sq_all)
        self.mask_x = jnp.asarray(mask_x)
        self.mask_y = jnp.asarray(mask_y)

        self._sched_cache = {}

    # tile schedule + per-row xy offsets, cached per (batch, spatial shapes)
    def _schedule(self, bsz, shapes):
        key = (bsz, shapes)
        if key in self._sched_cache:
            return self._sched_cache[key]
        tm = self.TM
        layer_ids, xyoff_parts, rows_list, rows_pad_list = [], [], [], []
        for i, (ny, nx) in enumerate(shapes):
            rows = bsz * ny * nx
            tiles = -(-rows // tm)
            rows_pad = tiles * tm
            layer_ids.append(np.full((tiles,), i, np.int32))
            s = self.strides[i]
            gy, gx = np.meshgrid(np.arange(ny, dtype=np.float32),
                                 np.arange(nx, dtype=np.float32), indexing="ij")
            off = np.stack([(gx - 0.5) * s, (gy - 0.5) * s],
                           axis=-1).reshape(ny * nx, 2)
            off = np.tile(off, (bsz, 1))
            off = np.pad(off, ((0, rows_pad - rows), (0, 0)))
            xyoff_parts.append(off.astype(np.float32))
            rows_list.append(rows)
            rows_pad_list.append(rows_pad)
        sched = dict(
            layer_ids=jnp.asarray(np.concatenate(layer_ids)),
            xyoff=jnp.asarray(np.concatenate(xyoff_parts, axis=0)),
            rows=tuple(rows_list),
            rows_pad=tuple(rows_pad_list),
        )
        self._sched_cache[key] = sched
        return sched

    def __call__(self, xs):
        na, no = self.num_anchor, self.num_output
        bsz = xs[0].shape[0]
        shapes = tuple((x.shape[2], x.shape[3]) for x in xs)
        sched = self._schedule(bsz, shapes)

        # NCHW -> NHWC rows, pad channels/rows, concat all layers
        parts = []
        for i, x in enumerate(xs):
            b, cin, ny, nx = x.shape
            rows = b * ny * nx
            xf = jnp.transpose(x, (0, 2, 3, 1)).reshape(rows, cin)
            xf = jnp.pad(xf, ((0, sched["rows_pad"][i] - rows),
                              (0, self.cpad - cin)))
            parts.append(xf)
        x_pad = jnp.concatenate(parts, axis=0)

        out = _detect_pallas(x_pad, sched["layer_ids"], sched["xyoff"],
                             self.w_all, self.b_all, self.sl_all, self.sq_all,
                             self.mask_x, self.mask_y, tm=self.TM)

        # split per layer, drop padding, match torch's
        # view(bs,na,no,ny,nx).permute(0,1,3,4,2).view(bs, na*ny*nx, no)
        z, r0 = [], 0
        for i, x in enumerate(xs):
            b, _, ny, nx = x.shape
            rows = b * ny * nx
            o = out[r0:r0 + rows, :self.cout]
            o = o.reshape(b, ny, nx, na, no)
            o = jnp.transpose(o, (0, 3, 1, 2, 4)).reshape(b, na * ny * nx, no)
            z.append(o)
            r0 += sched["rows_pad"][i]
        return jnp.concatenate(z, axis=1)

    # Pure-JAX reference (mirrors the PyTorch eval forward) for validation.
    def reference(self, xs):
        na, no = self.num_anchor, self.num_output
        anchors = jnp.asarray(self.anchors_np)
        z = []
        for i, x in enumerate(xs):
            bsz, cin, ny, nx = x.shape
            stride = self.strides[i]
            y = jnp.einsum("bchw,co->bohw", x, self.weights[i]) \
                + self.biases[i][None, :, None, None]
            y = y.reshape(bsz, na, no, ny, nx).transpose(0, 1, 3, 4, 2)
            s = jax.nn.sigmoid(y)
            yv, xv = jnp.meshgrid(jnp.arange(ny, dtype=jnp.float32),
                                  jnp.arange(nx, dtype=jnp.float32), indexing="ij")
            grid = jnp.stack([xv, yv], -1) - 0.5
            anchor_grid = anchors[i] * stride
            xy = (s[..., 0:2] * 2 + grid[None, None]) * stride
            wh = (s[..., 2:4] * 2) ** 2 * anchor_grid[None, :, None, None, :]
            conf = s[..., 4:]
            out = jnp.concatenate([xy, wh, conf], -1).reshape(bsz, na * ny * nx, no)
            z.append(out)
        return jnp.concatenate(z, axis=1)


if __name__ == "__main__":
    key = jax.random.PRNGKey(0)
    num_class = 3                      # num_output = 8, cout = 24
    filters = [8, 16, 32]              # per-layer input channels
    spatial = [(16, 16), (8, 8), (4, 4)]
    bsz = 2

    key, kinit = jax.random.split(key)
    detect = DetectPallas(filters, num_class, kinit)

    xs = []
    for cin, (ny, nx) in zip(filters, spatial):
        key, kx = jax.random.split(key)
        xs.append(jax.random.normal(kx, (bsz, cin, ny, nx), jnp.float32))

    out = jax.block_until_ready(detect(xs))
    ref = detect.reference(xs)

    na, no = detect.num_anchor, detect.num_output
    total_rows = sum(na * ny * nx for ny, nx in spatial)
    assert out.shape == (bsz, total_rows, no), out.shape
    max_err = float(jnp.max(jnp.abs(out - ref)))
    assert jnp.allclose(out, ref, atol=1e-3, rtol=1e-3), max_err

    print("KERNEL_OK")
</pallas_src>

<mosaic_0001>
module attributes {stable_mosaic.version = 11 : i64} {
  func.func @_detect_kernel(%arg0: i32, %arg1: memref<4xi32, #tpu.memory_space<smem>>, %arg2: memref<256x32xf32, #tpu.memory_space<vmem>>, %arg3: memref<1x32x128xf32, #tpu.memory_space<vmem>>, %arg4: memref<1x1x128xf32, #tpu.memory_space<vmem>>, %arg5: memref<1x1x128xf32, #tpu.memory_space<vmem>>, %arg6: memref<1x1x128xf32, #tpu.memory_space<vmem>>, %arg7: memref<1x128xf32, #tpu.memory_space<vmem>>, %arg8: memref<1x128xf32, #tpu.memory_space<vmem>>, %arg9: memref<256x2xf32, #tpu.memory_space<vmem>>, %arg10: memref<256x128xf32, #tpu.memory_space<vmem>>) attributes {dimension_semantics = [#tpu.dimension_semantics<parallel>], iteration_bounds = array<i64: 4>, scalar_prefetch = 1 : i64, scratch_operands = 0 : i64, tpu.core_type = #tpu.core_type<tc>, window_params = [{transform_indices = @transform_0, window_bounds = array<i64: 256, 32>}, {transform_indices = @transform_1, window_bounds = array<i64: 1, 32, 128>}, {transform_indices = @transform_2, window_bounds = array<i64: 1, 1, 128>}, {transform_indices = @transform_3, window_bounds = array<i64: 1, 1, 128>}, {transform_indices = @transform_4, window_bounds = array<i64: 1, 1, 128>}, {pipeline_mode = #tpu.pipeline_mode<synchronous>, transform_indices = @transform_5, window_bounds = array<i64: 1, 128>}, {pipeline_mode = #tpu.pipeline_mode<synchronous>, transform_indices = @transform_6, window_bounds = array<i64: 1, 128>}, {transform_indices = @transform_7, window_bounds = array<i64: 256, 2>}, {transform_indices = @transform_8, window_bounds = array<i64: 256, 128>}]} {
    %c0 = arith.constant 0 : index
    %c0_0 = arith.constant 0 : index
    %0 = vector.load %arg2[%c0, %c0_0] : memref<256x32xf32, #tpu.memory_space<vmem>>, vector<256x32xf32>
    %c0_1 = arith.constant 0 : index
    %c0_2 = arith.constant 0 : index
    %c0_3 = arith.constant 0 : index
    %1 = vector.load %arg3[%c0_1, %c0_2, %c0_3] : memref<1x32x128xf32, #tpu.memory_space<vmem>>, vector<1x32x128xf32>
    %2 = vector.shape_cast %1 : vector<1x32x128xf32> to vector<32x128xf32>
    %cst = arith.constant dense<0.000000e+00> : vector<256x128xf32>
    %3 = tpu.matmul %0, %2, %cst {dimension_numbers = #tpu.dot_dimension_numbers<[1], [0], [0], [1], [0, 0, 1, 1], [], []>} : vector<256x32xf32>, vector<32x128xf32>, vector<256x128xf32> -> vector<256x128xf32>
    %c0_4 = arith.constant 0 : index
    %c0_5 = arith.constant 0 : index
    %c0_6 = arith.constant 0 : index
    %4 = vector.load %arg4[%c0_4, %c0_5, %c0_6] : memref<1x1x128xf32, #tpu.memory_space<vmem>>, vector<1x1x128xf32>
    %5 = vector.shape_cast %4 : vector<1x1x128xf32> to vector<1x128xf32>
    %6 = vector.broadcast %5 : vector<1x128xf32> to vector<256x128xf32>
    %7 = arith.addf %3, %6 : vector<256x128xf32>
    %8 = arith.negf %7 : vector<256x128xf32>
    %9 = math.exp %8 : vector<256x128xf32>
    %cst_7 = arith.constant 1.000000e+00 : f32
    %10 = vector.broadcast %cst_7 : f32 to vector<256x128xf32>
    %11 = arith.addf %10, %9 : vector<256x128xf32>
    %12 = arith.divf %10, %11 : vector<256x128xf32>
    %c0_8 = arith.constant 0 : index
    %c0_9 = arith.constant 0 : index
    %c0_10 = arith.constant 0 : index
    %13 = vector.load %arg5[%c0_8, %c0_9, %c0_10] : memref<1x1x128xf32, #tpu.memory_space<vmem>>, vector<1x1x128xf32>
    %14 = vector.shape_cast %13 : vector<1x1x128xf32> to vector<1x128xf32>
    %c0_11 = arith.constant 0 : index
    %c0_12 = arith.constant 0 : index
    %c0_13 = arith.constant 0 : index
    %15 = vector.load %arg6[%c0_11, %c0_12, %c0_13] : memref<1x1x128xf32, #tpu.memory_space<vmem>>, vector<1x1x128xf32>
    %16 = vector.shape_cast %15 : vector<1x1x128xf32> to vector<1x128xf32>
    %17 = vector.broadcast %16 : vector<1x128xf32> to vector<256x128xf32>
    %18 = arith.mulf %12, %17 : vector<256x128xf32>
    %19 = vector.broadcast %14 : vector<1x128xf32> to vector<256x128xf32>
    %20 = arith.addf %19, %18 : vector<256x128xf32>
    %21 = arith.mulf %12, %20 : vector<256x128xf32>
    %c0_14 = arith.constant 0 : index
    %c0_15 = arith.constant 0 : index
    %22 = vector.load %arg9[%c0_14, %c0_15] : memref<256x2xf32, #tpu.memory_space<vmem>>, vector<256x1xf32>
    %c0_16 = arith.constant 0 : index
    %c0_17 = arith.constant 0 : index
    %23 = vector.load %arg7[%c0_16, %c0_17] : memref<1x128xf32, #tpu.memory_space<vmem>>, vector<1x128xf32>
    %24 = vector.broadcast %22 : vector<256x1xf32> to vector<256x128xf32>
    %25 = vector.broadcast %23 : vector<1x128xf32> to vector<256x128xf32>
    %26 = arith.mulf %24, %25 : vector<256x128xf32>
    %c0_18 = arith.constant 0 : index
    %c1 = arith.constant 1 : index
    %27 = vector.load %arg9[%c0_18, %c1] : memref<256x2xf32, #tpu.memory_space<vmem>>, vector<256x1xf32>
    %c0_19 = arith.constant 0 : index
    %c0_20 = arith.constant 0 : index
    %28 = vector.load %arg8[%c0_19, %c0_20] : memref<1x128xf32, #tpu.memory_space<vmem>>, vector<1x128xf32>
    %29 = vector.broadcast %27 : vector<256x1xf32> to vector<256x128xf32>
    %30 = vector.broadcast %28 : vector<1x128xf32> to vector<256x128xf32>
    %31 = arith.mulf %29, %30 : vector<256x128xf32>
    %32 = arith.addf %26, %31 : vector<256x128xf32>
    %33 = arith.addf %21, %32 : vector<256x128xf32>
    %c0_21 = arith.constant 0 : index
    %c0_22 = arith.constant 0 : index
    %34 = vector.load %arg10[%c0_21, %c0_22] : memref<256x128xf32, #tpu.memory_space<vmem>>, vector<256x128xf32>
    tpu.vector_store %arg10[%c0_21, %c0_22], %33 {strides = array<i32>} : memref<256x128xf32, #tpu.memory_space<vmem>>, vector<256x128xf32>,
    return
  }
  func.func @transform_0(%arg0: i32, %arg1: memref<4xi32, #tpu.memory_space<smem>>) -> (i32, i32) {
    %c0_i32 = arith.constant 0 : i32
    %c0_i32_0 = arith.constant 0 : i32
    return %arg0, %c0_i32 : i32, i32
  }
  func.func @transform_1(%arg0: i32, %arg1: memref<4xi32, #tpu.memory_space<smem>>) -> (i32, i32, i32) {
    %0 = arith.index_cast %arg0 : i32 to index
    %1 = memref.load %arg1[%0] : memref<4xi32, #tpu.memory_space<smem>>
    %c0_i32 = arith.constant 0 : i32
    %c0_i32_0 = arith.constant 0 : i32
    %c0_i32_1 = arith.constant 0 : i32
    return %1, %c0_i32, %c0_i32_0 : i32, i32, i32
  }
  func.func @transform_2(%arg0: i32, %arg1: memref<4xi32, #tpu.memory_space<smem>>) -> (i32, i32, i32) {
    %0 = arith.index_cast %arg0 : i32 to index
    %1 = memref.load %arg1[%0] : memref<4xi32, #tpu.memory_space<smem>>
    %c0_i32 = arith.constant 0 : i32
    %c0_i32_0 = arith.constant 0 : i32
    %c0_i32_1 = arith.constant 0 : i32
    return %1, %c0_i32, %c0_i32_0 : i32, i32, i32
  }
  func.func @transform_3(%arg0: i32, %arg1: memref<4xi32, #tpu.memory_space<smem>>) -> (i32, i32, i32) {
    %0 = arith.index_cast %arg0 : i32 to index
    %1 = memref.load %arg1[%0] : memref<4xi32, #tpu.memory_space<smem>>
    %c0_i32 = arith.constant 0 : i32
    %c0_i32_0 = arith.constant 0 : i32
    %c0_i32_1 = arith.constant 0 : i32
    return %1, %c0_i32, %c0_i32_0 : i32, i32, i32
  }
  func.func @transform_4(%arg0: i32, %arg1: memref<4xi32, #tpu.memory_space<smem>>) -> (i32, i32, i32) {
    %0 = arith.index_cast %arg0 : i32 to index
    %1 = memref.load %arg1[%0] : memref<4xi32, #tpu.memory_space<smem>>
    %c0_i32 = arith.constant 0 : i32
    %c0_i32_0 = arith.constant 0 : i32
    %c0_i32_1 = arith.constant 0 : i32
    return %1, %c0_i32, %c0_i32_0 : i32, i32, i32
  }
  func.func @transform_5(%arg0: i32, %arg1: memref<4xi32, #tpu.memory_space<smem>>) -> (i32, i32) {
    %c0_i32 = arith.constant 0 : i32
    %c0_i32_0 = arith.constant 0 : i32
    %c0_i32_1 = arith.constant 0 : i32
    return %c0_i32, %c0_i32_0 : i32, i32
  }
  func.func @transform_6(%arg0: i32, %arg1: memref<4xi32, #tpu.memory_space<smem>>) -> (i32, i32) {
    %c0_i32 = arith.constant 0 : i32
    %c0_i32_0 = arith.constant 0 : i32
    %c0_i32_1 = arith.constant 0 : i32
    return %c0_i32, %c0_i32_0 : i32, i32
  }
  func.func @transform_7(%arg0: i32, %arg1: memref<4xi32, #tpu.memory_space<smem>>) -> (i32, i32) {
    %c0_i32 = arith.constant 0 : i32
    %c0_i32_0 = arith.constant 0 : i32
    return %arg0, %c0_i32 : i32, i32
  }
  func.func @transform_8(%arg0: i32, %arg1: memref<4xi32, #tpu.memory_space<smem>>) -> (i32, i32) {
    %c0_i32 = arith.constant 0 : i32
    %c0_i32_0 = arith.constant 0 : i32
    return %arg0, %c0_i32 : i32, i32
  }
}

</mosaic_0001>

<bundles_post_ra>
// kernel: tpu_custom_call.1
= control target key start
LH: loop header
LB: loop body
LE: loop exit
PB: predicated region body
PF: predicated region fallthrough
CT: control target
= control target key end

     0   :  { %s2367_s12 = smov [#allocation3]   ;;  %s3855_s0 = inlined_call_operand.vmem [shape: s32[4], index: 0, kind: input, shape index: {}]   ;;  %s3856_s1 = inlined_call_operand.vmem [shape: f32[1024,32], index: 1, kind: input, shape index: {}]   ;;  %s3857_s2 = inlined_call_operand.vmem [shape: f32[3,32,128], index: 2, kind: input, shape index: {}]   ;;  %s3858_s3 = inlined_call_operand.vmem [shape: f32[3,1,128], index: 3, kind: input, shape index: {}]   ;;  %s3859_s4 = inlined_call_operand.vmem [shape: f32[3,1,128], index: 4, kind: input, shape index: {}]   ;;  %s3860_s5 = inlined_call_operand.vmem [shape: f32[3,1,128], index: 5, kind: input, shape index: {}]   ;;  %s3861_s6 = inlined_call_operand.vmem [shape: f32[1,128], index: 6, kind: input, shape index: {}]   ;;  %s3862_s7 = inlined_call_operand.vmem [shape: f32[1,128], index: 7, kind: input, shape index: {}]   ;;  %s3863_s8 = inlined_call_operand.vmem [shape: f32[1024,2], index: 8, kind: input, shape index: {}]   ;;  %s3864_s9 = inlined_call_operand.hbm [shape: f32[1024,128], index: 9, kind: output, shape index: {}]  }
   0x1   :  { %s15_s11 = sshll.u32 %s3855_s0, 4  ;;  %s16_s11 = int_to_ptr.vmem [resolvable:$true] %s15_s11 }
   0x2   :  { %18 = dma.vmem_to_smem %s16_s11, 16, %s2367_s12, [#allocation2] }
   0x3   :  { %2345 = dma.done.wait [#allocation2], 16 }
   0x4   :  { %2346 = vsyncadd [#allocation2], 4294967280 }
   0x5   :  { %21 = sfence }
   0x6   :  { %22 = vsyncpa [#allocation5], 0 }
   0x7   :  { %24 = vsyncpa [#allocation5 + $0x1], 0  ;;  %s2425_s13 = smov 0   ;;  %s2427_s14 = smov 0  }
   0x8   :  { %s2429_s15 = smov 0   ;;  %s2431_s16 = smov 0  }
   0x9 LB: > { %s2446_s0 = sadd.s32 4294967295, %s2365_s16   ;;  %s2007_s17 = sadd.s32 4294967294, %s2365_s16   ;;  %s2365_s16 = sphi %s2431_s16, %s4075_s16   ;;  %s2361_s15 = sphi %s2429_s15, %s4074_s15   ;;  %s2357_s14 = sphi %s2427_s14, %s4073_s14   ;;  %s2353_s13 = sphi %s2425_s13, %s4072_s13  }
   0xa   : > { %s2450_s18 = sadd.s32 1, %s2365_s16   ;;  %s243_s19 = sadd.s32 1, %s2361_s15 }
   0xb   : > { %s240_s20 = ssub.s32 %s2365_s16, %s2450_s18  ;;  %p253_p0 = scmp.ne.s32.totalorder %s2361_s15, %s2357_s14 }
   0xc   : > { %p241_p1 = scmp.eq.s32.totalorder %s240_s20, 0  ;;  %p254_p2 = scmp.eq.s32.totalorder %s2446_s0, 3 }
   0xd   : > { %p259_p3 = scmp.ne.s32.totalorder %s2357_s14, %s2353_s13  ;;  %p260_p4 = scmp.eq.s32.totalorder %s2007_s17, 3 }
   0xe   : > { %s2461_s21 = scalar_select %p241_p1, %s2361_s15, %s243_s19  }
   0xf   : > { %p2463_p5 = por %p254_p2, %p253_p0  ;;  %p2467_p6 = por %p260_p4, %p259_p3 }
  0x10   : > { %p2010_p7 = scmp.ge.s32.totalorder %s2365_s16, 1  ;;  %p336_p8 = scmp.lt.s32.totalorder %s2365_s16, 5 }
  0x12   : > { %p337_p9 = pnand %p2010_p7, %p336_p8 }
  0x14   : > { %340 = sbr.rel (%p337_p9) target bundleno = 383 (0x17f), region = 52 }
  0x19   : > { %s2012_s24 = sshll.u32 %s2446_s0, 5  ;;  %s399_s25 = sld [smem:[#allocation3 + %s2446_s0]]  ;;  %v2368_v0 = vmov 0   ;;  %vm468_vm0 = vcmask 261120  }
  0x1a   : > { %2147 = vset.pattern.permute.xlu2 %v2368_v0  ;;  %2146 = vset.pattern.permute.xlu1 %v2368_v0  ;;  %p394_p10 = scmp.lt.s32.totalorder %s2012_s24, 127  ;;  %s406_s30 = sld [smem:[#allocation3 + %s2446_s0]] }
  0x1b   : > { %2145 = vset.pattern.permute.xlu0 %v2368_v0  ;;  %s416_s28 = sld [smem:[#allocation3 + %s2446_s0]]  ;;  %s2088_s19 = sshll.u32 %s2446_s0, 8 }
  0x1c   : > { %s4077_s24 = smov (!%p394_p10, %s2012_s24), 127 }
  0x1d   : > { %s2013_s26 = sshll.u32 %s4077_s24, 3 }
  0x1e   : > { %s2478_s29 = scalar_lea.vmem %s3863_s8, %s2013_s26  ;;  %s2508_s24 = scalar_lea.vmem %s3856_s1, %s2013_s26 }
  0x1f   : > { %p400_p11 = scmp.lt.s32.totalorder %s399_s25, 2  ;;  %v2481_v1 = vld [vmem:[%s2478_s29 + $0x20] sm:$0xff]  ;;  %v2484_v2 = vld [vmem:[%s2478_s29 + $0x10] sm:$0xff]  ;;  %v2497_v6 = vld [vmem:[%s2478_s29 + $0x28] sm:$0xff] }
  0x20   : > { %v2487_v3 = vld [vmem:[%s2478_s29] sm:$0xff]  ;;  %1445 = vperm.xlu2 %2147, %v2481_v1   ;;  %1435 = vperm.xlu1 %2146, %v2484_v2   ;;  %v2500_v7 = vld [vmem:[%s2478_s29 + $0x18] sm:$0xff]  ;;  %v2503_v8 = vld [vmem:[%s2478_s29 + $0x8] sm:$0xff]  ;;  %p407_p12 = scmp.lt.s32.totalorder %s406_s30, 2 }
  0x21   : > { %s4079_s25 = smov (!%p400_p11, %s399_s25), 2  ;;  %1425 = vperm.xlu0 %2145, %v2487_v3   ;;  %v428_v11 = vld [vmem:[%s2508_s24] sm:$0xff]  ;;  %v2526_v14 = vld [vmem:[%s2478_s29 + $0x38] sm:$0xff]  ;;  %v2529_v15 = vld [vmem:[%s2478_s29 + $0x30] sm:$0xff]  ;;  %p417_p13 = scmp.lt.s32.totalorder %s416_s28, 2 }
  0x22   : > { %s2087_s10 = sshll.u32 %s4079_s25, 5  ;;  %s4081_s30 = smov (!%p407_p12, %s406_s30), 2  ;;  %v436_v12 = vld [vmem:[%s2508_s24 + $0x40] sm:$0xff]  ;;  %v429_v18 = vld [vmem:[%s2508_s24 + $0x8] sm:$0xff]  ;;  %v2543_v20 = vld [vmem:[%s2478_s29 + $0x58] sm:$0xff] }
  0x23   : > { %s404_s17 = scalar_lea.vmem %s3857_s2, %s2087_s10  ;;  %s2518_s27 = scalar_lea.vmem %s3858_s3, %s4081_s30  ;;  %v2523_v13 = vld [vmem:[%s2478_s29 + $0x40] sm:$0xff]  ;;  %v437_v19 = vld [vmem:[%s2508_s24 + $0x48] sm:$0xff]  ;;  %v2546_v21 = vld [vmem:[%s2478_s29 + $0x50] sm:$0xff] }
  0x24   : > { %v463_v4 = vld [vmem:[%s404_s17 + $0x18] sm:$0xff]  ;;  %v462_v5 = vld [vmem:[%s404_s17 + $0x10] sm:$0xff]  ;;  %v461_v9 = vld [vmem:[%s404_s17 + $0x8] sm:$0xff]  ;;  %s411_s30 = sld [smem:[#allocation3 + %s2446_s0]]  ;;  %s4083_s28 = smov (!%p417_p13, %s416_s28), 2 }
  0x25   : > { %577 = vmatpush.msra.mxu0 %v463_v4  ;;  %2089 = vmatpush.msra.mxu1 %v463_v4  ;;  %v460_v10 = vld [vmem:[%s404_s17] sm:$0xff]  ;;  %v2549_v22 = vld [vmem:[%s2478_s29 + $0x48] sm:$0xff]  ;;  %v430_v25 = vld [vmem:[%s2508_s24 + $0x10] sm:$0xff]  ;;  %s2603_s12 = scalar_lea.vmem %s3860_s5, %s4083_s28  ;;  %s390_s28 = sand.u32 1, %s2357_s14  }
  0x26   : > { %2090 = vmatpush.msra.mxu2 %v463_v4  ;;  %2091 = vmatpush.msra.mxu3 %v463_v4  ;;  %v444_v16 = vld [vmem:[%s2508_s24 + $0x80] sm:$0xff]  ;;  %v445_v23 = vld [vmem:[%s2508_s24 + $0x88] sm:$0xff]  ;;  %v438_v26 = vld [vmem:[%s2508_s24 + $0x50] sm:$0xff]  ;;  %s1879_s26 = scalar_lea.sflag [#allocation5], %s390_s28  ;;  %s2321_s17 = scalar_lea.hbm %s3864_s9, 1024 }
  0x27   : > { %578 = vmatpush.msra.mxu0 %v462_v5  ;;  %2092 = vmatpush.msra.mxu1 %v462_v5  ;;  %v452_v17 = vld [vmem:[%s2508_s24 + $0xc0] sm:$0xff]  ;;  %v453_v24 = vld [vmem:[%s2508_s24 + $0xc8] sm:$0xff]  ;;  %v2563_v27 = vld [vmem:[%s2478_s29 + $0x70] sm:$0xff] }
  0x28   : > { %1450 = vperm.xlu2 %2147, %v2497_v6   ;;  %1440 = vperm.xlu1 %2146, %v2500_v7   ;;  %v2566_v28 = vld [vmem:[%s2478_s29 + $0x68] sm:$0xff]  ;;  %v2569_v29 = vld [vmem:[%s2478_s29 + $0x60] sm:$0xff]  ;;  %v446_v30 = vld [vmem:[%s2508_s24 + $0x90] sm:$0xff] }
  0x29   : > { %1430 = vperm.xlu0 %2145, %v2503_v8   ;;  %579 = vmatpush.msra.mxu0 %v461_v9  ;;  %v454_v31 = vld [vmem:[%s2508_s24 + $0xd0] sm:$0xff]  ;;  %v431_v32 = vld [vmem:[%s2508_s24 + $0x18] sm:$0xff]  ;;  %v2585_v34 = vld [vmem:[%s2478_s29 + $0x88] sm:$0xff] }
  0x2a   : > { %2095 = vmatpush.msra.mxu1 %v461_v9  ;;  %2093 = vmatpush.msra.mxu2 %v462_v5  ;;  %v439_v33 = vld [vmem:[%s2508_s24 + $0x58] sm:$0xff]  ;;  %v2588_v35 = vld [vmem:[%s2478_s29 + $0x80] sm:$0xff]  ;;  %p412_p0 = scmp.lt.s32.totalorder %s411_s30, 2  ;;  %v2621_v43 = vld [vmem:[%s2478_s29 + $0x90] sm:$0xff] }
  0x2b   : > { %580 = vmatpush.msra.mxu0 %v460_v10  ;;  %2094 = vmatpush.msra.mxu3 %v462_v5  ;;  %v2591_v36 = vld [vmem:[%s2478_s29 + $0x78] sm:$0xff]  ;;  %v432_v39 = vld [vmem:[%s2508_s24 + $0x20] sm:$0xff]  ;;  %v433_v46 = vld [vmem:[%s2508_s24 + $0x28] sm:$0xff] }
  0x2c   : > { %2098 = vmatpush.msra.mxu1 %v460_v10  ;;  %2018 = vmatmul.msk.f32.vlgmr.msra.gmra.mxu0 %vm468_vm0, %v428_v11  ;;  %v447_v37 = vld [vmem:[%s2508_s24 + $0x98] sm:$0xff]  ;;  %s4085_s30 = smov (!%p412_p0, %s411_s30), 2  ;;  %v440_v40 = vld [vmem:[%s2508_s24 + $0x60] sm:$0xff]  ;;  %v441_v47 = vld [vmem:[%s2508_s24 + $0x68] sm:$0xff]  ;;  %v2369_v11 = vmov 1  }
  0x2d   : > { %2026 = vmatmul.msk.f32.vlgmr.msra.gmra.mxu1 %vm468_vm0, %v436_v12  ;;  %2096 = vmatpush.msra.mxu2 %v461_v9  ;;  %v455_v38 = vld [vmem:[%s2508_s24 + $0xd8] sm:$0xff]  ;;  %s2609_s20 = scalar_lea.vmem %s3859_s4, %s4085_s30  ;;  %v2615_v41 = vld [vmem:[%s2478_s29 + $0xa0] sm:$0xff]  ;;  %v2638_v49 = vld [vmem:[%s2478_s29 + $0xb0] sm:$0xff]  ;;  %s2934_s30 = sshll.u32 %s390_s28, 8 }
  0x2e   : > { %2097 = vmatpush.msra.mxu3 %v461_v9  ;;  %v2618_v42 = vld [vmem:[%s2478_s29 + $0x98] sm:$0xff]  ;;  %v448_v44 = vld [vmem:[%s2508_s24 + $0xa0] sm:$0xff]  ;;  %v2641_v50 = vld [vmem:[%s2478_s29 + $0xa8] sm:$0xff]  ;;  %s2978_s10 = scalar_lea.vmem [#allocation4], %s2934_s30 }
  0x2f   : > { %2099 = vmatpush.msra.mxu2 %v460_v10  ;;  %v456_v45 = vld [vmem:[%s2508_s24 + $0xe0] sm:$0xff]  ;;  %v2635_v48 = vld [vmem:[%s2478_s29 + $0xb8] sm:$0xff]  ;;  %v449_v51 = vld [vmem:[%s2508_s24 + $0xa8] sm:$0xff]  ;;  %s1891_s0 = sshll.u32 %s2978_s10, 4  ;;  %s1892_s0 = int_to_ptr.vmem [resolvable:$true] %s1891_s0 }
  0x30   : > { %1465 = vperm.xlu2 %2147, %v2523_v13   ;;  %1460 = vperm.xlu1 %2146, %v2526_v14   ;;  %v457_v52 = vld [vmem:[%s2508_s24 + $0xe8] sm:$0xff]  ;;  %v434_v53 = vld [vmem:[%s2508_s24 + $0x30] sm:$0xff]  ;;  %v2661_v57 = vld [vmem:[%s2478_s29 + $0xc0] sm:$0xff] }
  0x31   : > { %1455 = vperm.xlu0 %2145, %v2529_v15   ;;  %2034 = vmatmul.msk.f32.vlgmr.msra.gmra.mxu2 %vm468_vm0, %v444_v16  ;;  %v442_v54 = vld [vmem:[%s2508_s24 + $0x70] sm:$0xff]  ;;  %v2658_v56 = vld [vmem:[%s2478_s29 + $0xc8] sm:$0xff]  ;;  %v435_v60 = vld [vmem:[%s2508_s24 + $0x38] sm:$0xff] }
  0x32   : > { %2100 = vmatpush.msra.mxu3 %v460_v10  ;;  %v2655_v55 = vld [vmem:[%s2478_s29 + $0xd0] sm:$0xff]  ;;  %v443_v61 = vld [vmem:[%s2508_s24 + $0x78] sm:$0xff]  ;;  %v2674_v62 = vld [vmem:[%s2478_s29 + $0xe8] sm:$0xff] }
  0x33   : > { %2042 = vmatmul.msk.f32.vlgmr.msra.gmra.mxu3 %vm468_vm0, %v452_v17  ;;  %v450_v58 = vld [vmem:[%s2508_s24 + $0xb0] sm:$0xff]  ;;  %v2677_v63 = vld [vmem:[%s2478_s29 + $0xe0] sm:$0xff]  ;;  %v2681_v0 = vld [vmem:[%s2478_s29 + $0xd8] sm:$0xff] }
  0x34   : > { %2019 = vmatmul.msk.f32.gmra.mxu0 %vm468_vm0, %v429_v18  ;;  %v458_v59 = vld [vmem:[%s2508_s24 + $0xf0] sm:$0xff]  ;;  %v451_v4 = vld [vmem:[%s2508_s24 + $0xb8] sm:$0xff]  ;;  %v2718_v18 = vld [vmem:[%s2518_s27] ss:$0 sm:$0xff] }
  0x35   : > { %2027 = vmatmul.msk.f32.gmra.mxu1 %vm468_vm0, %v437_v19  ;;  %v459_v5 = vld [vmem:[%s2508_s24 + $0xf8] sm:$0xff]  ;;  %v2694_v10 = vld [vmem:[%s2478_s29 + $0xf0] sm:$0xff]  ;;  %s1890_s24 = scalar_lea.hbm %s3864_s9, %s2088_s19 }
  0x36   : > { %v2691_v9 = vld [vmem:[%s2478_s29 + $0xf8] sm:$0xff]  ;;  %s1893_s25 = sshll.u32 %s1890_s24, 4  ;;  %s1894_s25 = int_to_ptr.hbm [resolvable:$true] %s1893_s25 }
  0x37   : > { %s2315_s30 = sshra.s32 %s1894_s25, 4  ;;  %s2316_s30 = int_to_ptr.hbm [resolvable:$true] %s2315_s30 }
  0x38   : > { %1480 = vperm.xlu2 %2147, %v2543_v20   ;;  %1475 = vperm.xlu1 %2146, %v2546_v21   ;;  %p2322_p4 = scmp.lt.s32.totalorder %s2316_s30, %s3864_s9 }
  0x39   : > { %1470 = vperm.xlu0 %2145, %v2549_v22   ;;  %2035 = vmatmul.msk.f32.gmra.mxu2 %vm468_vm0, %v445_v23 }
  0x3b   : > { %2043 = vmatmul.msk.f32.gmra.mxu3 %vm468_vm0, %v453_v24 }
  0x3c   : > { %2020 = vmatmul.msk.f32.gmra.mxu0 %vm468_vm0, %v430_v25 }
  0x3d   : > { %2028 = vmatmul.msk.f32.gmra.mxu1 %vm468_vm0, %v438_v26 }
  0x40   : > { %1495 = vperm.xlu2 %2147, %v2563_v27   ;;  %1490 = vperm.xlu1 %2146, %v2566_v28  }
  0x41   : > { %1485 = vperm.xlu0 %2145, %v2569_v29   ;;  %2036 = vmatmul.msk.f32.gmra.mxu2 %vm468_vm0, %v446_v30 }
  0x43   : > { %2044 = vmatmul.msk.f32.gmra.mxu3 %vm468_vm0, %v454_v31 }
  0x44   : > { %2021 = vmatmul.msk.f32.gmra.mxu0 %vm468_vm0, %v431_v32 }
  0x45   : > { %2029 = vmatmul.msk.f32.gmra.mxu1 %vm468_vm0, %v439_v33 }
  0x48   : > { %1510 = vperm.xlu2 %2147, %v2585_v34   ;;  %1505 = vperm.xlu1 %2146, %v2588_v35  }
  0x49   : > { %1500 = vperm.xlu0 %2145, %v2591_v36   ;;  %2037 = vmatmul.msk.f32.gmra.mxu2 %vm468_vm0, %v447_v37 }
  0x4b   : > { %2045 = vmatmul.msk.f32.gmra.mxu3 %vm468_vm0, %v455_v38 }
  0x4c   : > { %2022 = vmatmul.msk.f32.gmra.mxu0 %vm468_vm0, %v432_v39 }
  0x4d   : > { %2030 = vmatmul.msk.f32.gmra.mxu1 %vm468_vm0, %v440_v40 }
  0x50   : > { %1525 = vperm.xlu2 %2147, %v2615_v41   ;;  %1520 = vperm.xlu1 %2146, %v2618_v42  }
  0x51   : > { %1515 = vperm.xlu0 %2145, %v2621_v43   ;;  %2038 = vmatmul.msk.f32.gmra.mxu2 %vm468_vm0, %v448_v44 }
  0x53   : > { %2046 = vmatmul.msk.f32.gmra.mxu3 %vm468_vm0, %v456_v45 }
  0x54   : > { %2023 = vmatmul.msk.f32.gmra.mxu0 %vm468_vm0, %v433_v46 }
  0x55   : > { %2031 = vmatmul.msk.f32.gmra.mxu1 %vm468_vm0, %v441_v47 }
  0x58   : > { %1540 = vperm.xlu2 %2147, %v2635_v48   ;;  %1535 = vperm.xlu1 %2146, %v2638_v49  }
  0x59   : > { %1530 = vperm.xlu0 %2145, %v2641_v50   ;;  %2039 = vmatmul.msk.f32.gmra.mxu2 %vm468_vm0, %v449_v51 }
  0x5b   : > { %2047 = vmatmul.msk.f32.gmra.mxu3 %vm468_vm0, %v457_v52 }
  0x5c   : > { %2024 = vmatmul.msk.f32.gmra.mxu0 %vm468_vm0, %v434_v53 }
  0x5d   : > { %2032 = vmatmul.msk.f32.gmra.mxu1 %vm468_vm0, %v442_v54 }
  0x60   : > { %1555 = vperm.xlu2 %2147, %v2655_v55   ;;  %1550 = vperm.xlu1 %2146, %v2658_v56  }
  0x61   : > { %1545 = vperm.xlu0 %2145, %v2661_v57   ;;  %2040 = vmatmul.msk.f32.gmra.mxu2 %vm468_vm0, %v450_v58 }
  0x63   : > { %2048 = vmatmul.msk.f32.gmra.mxu3 %vm468_vm0, %v458_v59 }
  0x64   : > { %2025 = vmatmul.msk.f32.gmra.mxu0 %vm468_vm0, %v435_v60 }
  0x65   : > { %2033 = vmatmul.msk.f32.gmra.mxu1 %vm468_vm0, %v443_v61 }
  0x68   : > { %1570 = vperm.xlu2 %2147, %v2674_v62   ;;  %1565 = vperm.xlu1 %2146, %v2677_v63  }
  0x69   : > { %1560 = vperm.xlu0 %2145, %v2681_v0   ;;  %2041 = vmatmul.msk.f32.gmra.mxu2 %vm468_vm0, %v451_v4 }
  0x6b   : > { %2049 = vmatmul.msk.f32.gmra.mxu3 %vm468_vm0, %v459_v5 }
  0x70   : > { %2148 = vset.pattern.permute.xlu2 %v2369_v11  ;;  %1580 = vperm.xlu1 %2146, %v2691_v9  }
  0x71   : > { %1575 = vperm.xlu0 %2145, %v2694_v10   ;;  %1620 = vperm.xlu2 %2148, %v2487_v3  }
  0x78   : > { %2150 = vset.pattern.permute.xlu1 %v2369_v11 }
  0x79   : > { %2149 = vset.pattern.permute.xlu0 %v2369_v11  ;;  %1628 = vperm.xlu1 %2150, %v2484_v2  }
  0x7a   : > { %1632 = vperm.xlu2 %2148, %v2500_v7   ;;  %1624 = vperm.xlu0 %2149, %v2503_v8   ;;  %v1446_v12 = vpop.permute.xlu2 %1445 }
  0x81   : > { %1636 = vperm.xlu1 %2150, %v2481_v1  }
  0x82   : > { %1640 = vperm.xlu2 %2148, %v2497_v6   ;;  %1644 = vperm.xlu0 %2149, %v2529_v15   ;;  %v1451_v16 = vpop.permute.xlu2 %1450 }
  0x89   : > { %1648 = vperm.xlu1 %2150, %v2526_v14  }
  0x8a   : > { %1652 = vperm.xlu2 %2148, %v2523_v13   ;;  %1656 = vperm.xlu0 %2149, %v2549_v22   ;;  %v1466_v3 = vpop.permute.xlu2 %1465 }
  0x91   : > { %1660 = vperm.xlu1 %2150, %v2546_v21  }
  0x92   : > { %1664 = vperm.xlu2 %2148, %v2543_v20   ;;  %1668 = vperm.xlu0 %2149, %v2569_v29   ;;  %v1481_v1 = vpop.permute.xlu2 %1480  ;;  %v1436_v2 = vpop.permute.xlu1 %1435  ;;  %v2729_v29 = vld [vmem:[%s3861_s6] ss:$0 sm:$0xff] }
  0x93   : > { %v1426_v6 = vpop.permute.xlu0 %1425  ;;  %v2736_v37 = vmul.f32 %v2729_v29, %v1446_v12  ;;  %v2739_v38 = vmul.f32 %v2729_v29, %v1451_v16  ;;  %v2742_v39 = vmul.f32 %v2729_v29, %v1466_v3  ;;  %v2751_v47 = vmul.f32 %v2729_v29, %v1436_v2 }
  0x99   : > { %1672 = vperm.xlu1 %2150, %v2566_v28  }
  0x9a   : > { %1676 = vperm.xlu2 %2148, %v2563_v27   ;;  %1680 = vperm.xlu0 %2149, %v2591_v36   ;;  %v1496_v7 = vpop.permute.xlu2 %1495  ;;  %v1441_v8 = vpop.permute.xlu1 %1440 }
  0x9b   : > { %v1431_v13 = vpop.permute.xlu0 %1430  ;;  %v2759_v51 = vmul.f32 %v2729_v29, %v1496_v7  ;;  %v2762_v52 = vmul.f32 %v2729_v29, %v1441_v8 }
  0x9c   : > { %v2766_v54 = vmul.f32 %v2729_v29, %v1431_v13 }
  0xa1   : > { %1684 = vperm.xlu1 %2150, %v2588_v35  }
  0xa2   : > { %1688 = vperm.xlu2 %2148, %v2585_v34   ;;  %1692 = vperm.xlu0 %2149, %v2621_v43   ;;  %v1511_v14 = vpop.permute.xlu2 %1510  ;;  %v1461_v15 = vpop.permute.xlu1 %1460  ;;  %v2745_v43 = vmul.f32 %v2729_v29, %v1481_v1 }
  0xa3   : > { %v1456_v17 = vpop.permute.xlu0 %1455  ;;  %v2774_v59 = vmul.f32 %v2729_v29, %v1461_v15 }
  0xa4   : > { %v2777_v60 = vmul.f32 %v2729_v29, %v1456_v17 }
  0xa9   : > { %1696 = vperm.xlu1 %2150, %v2618_v42   ;;  %v582_v19 = vpop.f32.mrf.mxu0 }
  0xaa   : > { %1700 = vperm.xlu2 %2148, %v2615_v41   ;;  %1704 = vperm.xlu0 %2149, %v2641_v50   ;;  %v583_v20 = vadd.f32 %v2718_v18, %v582_v19  ;;  %v606_v21 = vpop.f32.mrf.mxu1  ;;  %v1526_v22 = vpop.permute.xlu2 %1525 }
  0xab   : > { %v607_v23 = vadd.f32 %v2718_v18, %v606_v21  ;;  %v1476_v24 = vpop.permute.xlu1 %1475  ;;  %v1471_v25 = vpop.permute.xlu0 %1470  ;;  %v2780_v61 = vmul.f32 %v2729_v29, %v1526_v22 }
  0xac   : > { %v2050_v26 = vmul.f32 -1.442695, %v583_v20  ;;  %v2788_v1 = vmul.f32 %v2729_v29, %v1476_v24  ;;  %v2791_v2 = vmul.f32 %v2729_v29, %v1471_v25 }
  0xad   : > { %v2058_v27 = vmul.f32 -1.442695, %v607_v23  ;;  %3911 = vst [vmem:[#allocation8_spill] sm:$0xff] %v2780_v61 }
  0xae   : > { %2156 = vpow2.f32 %v2050_v26  ;;  %3912 = vst [vmem:[#allocation9_spill] sm:$0xff] %v2788_v1 }
  0xaf   : > { %2158 = vpow2.f32 %v2058_v27 }
  0xb1   : > { %1708 = vperm.xlu1 %2150, %v2638_v49   ;;  %v585_v28 = vpop.f32.mrf.mxu0 }
  0xb2   : > { %1712 = vperm.xlu2 %2148, %v2635_v48   ;;  %1716 = vperm.xlu0 %2149, %v2661_v57   ;;  %v586_v30 = vadd.f32 %v2718_v18, %v585_v28  ;;  %v609_v31 = vpop.f32.mrf.mxu1  ;;  %v1541_v32 = vpop.permute.xlu2 %1540  ;;  %v2754_v48 = vmul.f32 %v2729_v29, %v1426_v6  ;;  %v2769_v57 = vmul.f32 %v2729_v29, %v1511_v14 }
  0xb3   : > { %v610_v33 = vadd.f32 %v2718_v18, %v609_v31  ;;  %v1491_v34 = vpop.permute.xlu1 %1490  ;;  %v1486_v35 = vpop.permute.xlu0 %1485 }
  0xb4   : > { %v2157_v36 = vpop.eup %2156  ;;  %v2051_v40 = vmul.f32 -1.442695, %v586_v30  ;;  %v630_v41 = vpop.f32.mrf.mxu2  ;;  %v2798_v8 = vmul.f32 %v2729_v29, %v1491_v34  ;;  %v2801_v13 = vmul.f32 %v2729_v29, %v1486_v35 }
  0xb5   : > { %v2159_v42 = vpop.eup %2158  ;;  %v2747_v44 = vadd.f32 1.0, %v2157_v36  ;;  %v2059_v45 = vmul.f32 -1.442695, %v610_v33  ;;  %v631_v46 = vadd.f32 %v2718_v18, %v630_v41 }
  0xb6   : > { %v2756_v49 = vadd.f32 1.0, %v2159_v42  ;;  %2160 = vpow2.f32 %v2051_v40  ;;  %v654_v50 = vpop.f32.mrf.mxu3  ;;  %3914 = vst [vmem:[#allocation11_spill] sm:$0xff] %v2798_v8 }
  0xb7   : > { %2162 = vrcp.f32 %v2747_v44  ;;  %v2066_v53 = vmul.f32 -1.442695, %v631_v46  ;;  %v655_v58 = vadd.f32 %v2718_v18, %v654_v50  ;;  %v815_v16 = vand.u32 2147483647, %v2747_v44  ;;  %3915 = vst [vmem:[#allocation12_spill] sm:$0xff] %v2801_v13 }
  0xb8   : > { %2164 = vrcp.f32 %v2756_v49  ;;  %v817_v22 = vand.u32 2147483648, %v2747_v44  ;;  %vm811_vm1 = vweird.f32 %v2747_v44  ;;  %vm931_vm5 = vweird.f32 %v2756_v49 }
  0xb9   : > { %2166 = vpow2.f32 %v2059_v45  ;;  %1720 = vperm.xlu1 %2150, %v2658_v56   ;;  %v588_v4 = vpop.f32.mrf.mxu0  ;;  %v2074_v3 = vmul.f32 -1.442695, %v655_v58  ;;  %v2794_v56 = vmul.f32 %v2729_v29, %v1541_v32  ;;  %vm2814_vm2 = vcmp.eq.f32.partialorder %v815_v16, 8.507059e+37 }
  0xba   : > { %2168 = vpow2.f32 %v2066_v53  ;;  %1724 = vperm.xlu2 %2148, %v2655_v55   ;;  %1728 = vperm.xlu0 %2149, %v2681_v0   ;;  %v589_v5 = vadd.f32 %v2718_v18, %v588_v4  ;;  %v612_v11 = vpop.f32.mrf.mxu1  ;;  %v1556_v12 = vpop.permute.xlu2 %1555  ;;  %v818_v41 = vor.u32 1.1754944e-38, %v817_v22 }
  0xbb   : > { %3913 = vst [vmem:[#allocation10_spill] sm:$0xff] %v2794_v56  ;;  %v613_v55 = vadd.f32 %v2718_v18, %v612_v11  ;;  %v1506_v6 = vpop.permute.xlu1 %1505  ;;  %v1501_v0 = vpop.permute.xlu0 %1500  ;;  %2170 = vpow2.f32 %v2074_v3  ;;  %v2828_v36 = vmul.f32 %v2729_v29, %v1556_v12  ;;  %v2845_v12 = vld [vmem:[%s2603_s12] ss:$0 sm:$0xff] }
  0xbc   : > { %v2161_v7 = vpop.eup %2160  ;;  %v2052_v14 = vmul.f32 -1.442695, %v589_v5  ;;  %v633_v15 = vpop.f32.mrf.mxu2  ;;  %v2833_v45 = vmul.f32 %v2729_v29, %v1506_v6 }
  0xbd   : > { %v2803_v17 = vpop.eup %2162  ;;  %v2805_v19 = vadd.f32 1.0, %v2161_v7  ;;  %v2060_v20 = vmul.f32 -1.442695, %v613_v55  ;;  %v634_v21 = vadd.f32 %v2718_v18, %v633_v15  ;;  %3919 = vst [vmem:[#allocation14_spill] sm:$0xff] %v2828_v36 }
  0xbe   : > { %v2809_v23 = vpop.eup %2164  ;;  %v807_v24 = vmul.f32 %v2803_v17, %v2747_v44  ;;  %2172 = vpow2.f32 %v2052_v14  ;;  %v657_v26 = vpop.f32.mrf.mxu3  ;;  %vm812_vm3 = vweird.f32 %v2803_v17  ;;  %3920 = vst [vmem:[#allocation15_spill] sm:$0xff] %v2833_v45 }
  0xbf   : > { %v2167_v27 = vpop.eup %2166  ;;  %v927_v28 = vmul.f32 %v2809_v23, %v2756_v49  ;;  %2174 = vrcp.f32 %v2805_v19  ;;  %v2067_v30 = vmul.f32 -1.442695, %v634_v21  ;;  %v658_v34 = vadd.f32 %v2718_v18, %v657_v26  ;;  %vm2851_vm4 = vmor %vm811_vm1, %vm812_vm3  ;;  %v2874_v26 = vld [vmem:[%s2609_s20] ss:$0 sm:$0xff] }
  0xc0   : > { %v2169_v31 = vpop.eup %2168  ;;  %v808_v32 = vsub.f32 1.0, %v807_v24  ;;  %v2822_v33 = vadd.f32 1.0, %v2167_v27  ;;  %2176 = vpow2.f32 %v2060_v20  ;;  %vm932_vm7 = vweird.f32 %v2809_v23 }
  0xc1   : > { %v2825_v35 = vadd.f32 1.0, %v2169_v31  ;;  %2178 = vpow2.f32 %v2067_v30  ;;  %1732 = vperm.xlu1 %2150, %v2677_v63   ;;  %v591_v40 = vpop.f32.mrf.mxu0  ;;  %v2171_v42 = vpop.eup %2170  ;;  %v2841_v63 = vmul.f32 %v2729_v29, %v1501_v0  ;;  %v928_v3 = vsub.f32 1.0, %v927_v28  ;;  %vm3017_vm10 = vmor %vm931_vm5, %vm932_vm7 }
  0xc2   : > { %2180 = vrcp.f32 %v2822_v33  ;;  %1736 = vperm.xlu2 %2148, %v2674_v62   ;;  %1740 = vperm.xlu0 %2149, %v2694_v10   ;;  %v592_v46 = vadd.f32 %v2718_v18, %v591_v40  ;;  %v615_v50 = vpop.f32.mrf.mxu1  ;;  %v1571_v53 = vpop.permute.xlu2 %1570  ;;  %v809_v58 = vmul.f32 %v2803_v17, %v808_v32  ;;  %v2855_v10 = vadd.f32 1.0, %v2171_v42 }
  0xc3   : > { %3918 = vst [vmem:[#allocation13_spill] sm:$0xff] %v2825_v35  ;;  %2182 = vrcp.f32 %v2825_v35  ;;  %v616_v4 = vadd.f32 %v2718_v18, %v615_v50  ;;  %v1521_v5 = vpop.permute.xlu1 %1520  ;;  %v1516_v11 = vpop.permute.xlu0 %1515  ;;  %v2858_v7 = vmul.f32 -1.442695, %v658_v34  ;;  %v2871_v24 = vmul.f32 %v2729_v29, %v1571_v53 }
  0xc4   : > { %3921 = vst [vmem:[#allocation16_spill] sm:$0xff] %v2841_v63  ;;  %v2173_v16 = vpop.eup %2172  ;;  %v2053_v55 = vmul.f32 -1.442695, %v592_v46  ;;  %v636_v6 = vpop.f32.mrf.mxu2  ;;  %v810_v0 = vadd.f32 %v2803_v17, %v809_v58  ;;  %2184 = vrcp.f32 %v2855_v10  ;;  %v2898_v25 = vmul.f32 %v2729_v29, %v1521_v5  ;;  %v2904_v58 = vld [vmem:[%s3862_s7] ss:$0 sm:$0xff] }
  0xc5   : > { %3924 = vst [vmem:[#allocation17_spill] sm:$0xff] %v2855_v10  ;;  %v2860_v14 = vpop.eup %2174  ;;  %v2862_v15 = vadd.f32 1.0, %v2173_v16  ;;  %v2061_v44 = vmul.f32 -1.442695, %v616_v4  ;;  %v637_v20 = vadd.f32 %v2718_v18, %v636_v6  ;;  %v2919_v6 = vmul.f32 %v2729_v29, %v1516_v11 }
  0xc6   : > { %v2177_v21 = vpop.eup %2176  ;;  %v2868_v22 = vmul.f32 %v2860_v14, %v2805_v19  ;;  %2186 = vpow2.f32 %v2053_v55  ;;  %3925 = vst [vmem:[#allocation18_spill] sm:$0xff] %v2871_v24  ;;  %v814_v27 = vsel %vm2851_vm4, %v2803_v17, %v810_v0  ;;  %v660_v28 = vpop.f32.mrf.mxu3  ;;  %v929_v17 = vmul.f32 %v2809_v23, %v928_v3 }
  0xc7   : > { %v2179_v30 = vpop.eup %2178  ;;  %2188 = vrcp.f32 %v2862_v15  ;;  %v2880_v31 = vadd.f32 1.0, %v2177_v21  ;;  %v2068_v32 = vmul.f32 -1.442695, %v637_v20  ;;  %v819_v34 = vsel %vm2814_vm2, %v818_v41, %v814_v27  ;;  %3928 = vst [vmem:[#allocation21_spill] sm:$0xff] %v2898_v25 }
  0xc8   : > { %v2884_v40 = vpop.eup %2180  ;;  %v2886_v42 = vadd.f32 1.0, %v2179_v30  ;;  %2190 = vpow2.f32 %v2061_v44  ;;  %v1291_v46 = vmul.f32 %v2845_v12, %v819_v34  ;;  %v661_v4 = vadd.f32 %v2718_v18, %v660_v28  ;;  %3931 = vst [vmem:[#allocation24_spill] sm:$0xff] %v2919_v6 }
  0xc9   : > { %3926 = vst [vmem:[#allocation19_spill] sm:$0xff] %v2880_v31  ;;  %v2890_v50 = vpop.eup %2182  ;;  %v2894_v53 = vmul.f32 %v2884_v40, %v2822_v33  ;;  %2192 = vrcp.f32 %v2880_v31  ;;  %1744 = vperm.xlu1 %2150, %v2691_v9   ;;  %v594_v41 = vpop.f32.mrf.mxu0  ;;  %v2926_v24 = vadd.f32 %v2809_v23, %v929_v17  ;;  %vm841_vm1 = vweird.f32 %v2862_v15 }
  0xca   : > { %3927 = vst [vmem:[#allocation20_spill] sm:$0xff] %v2890_v50  ;;  %v2909_v62 = vmul.f32 %v2890_v50, %v2825_v35  ;;  %2194 = vrcp.f32 %v2886_v42  ;;  %v595_v16 = vadd.f32 %v2718_v18, %v594_v41  ;;  %v618_v5 = vpop.f32.mrf.mxu1  ;;  %v1326_v9 = vadd.f32 %v2874_v26, %v1291_v46  ;;  %v2915_v3 = vpop.eup %2184 }
  0xcb   : > { %3930 = vst [vmem:[#allocation23_spill] sm:$0xff] %v2915_v3  ;;  %2196 = vpow2.f32 %v2068_v32  ;;  %v619_v0 = vadd.f32 %v2718_v18, %v618_v5  ;;  %v1536_v44 = vpop.permute.xlu1 %1535  ;;  %v1531_v20 = vpop.permute.xlu0 %1530  ;;  %v2923_v46 = vmul.f32 -1.442695, %v661_v4 }
  0xcc   : > { %3929 = vst [vmem:[#allocation22_spill] sm:$0xff] %v2909_v62  ;;  %v2187_v21 = vpop.eup %2186  ;;  %v2054_v28 = vmul.f32 -1.442695, %v595_v16  ;;  %v1621_v30 = vpop.permute.xlu2 %1620  ;;  %v1358_v5 = vmul.f32 %v1326_v9, %v819_v34  ;;  %v2952_v9 = vmul.f32 %v2915_v3, %v2855_v10 }
  0xcd   : > { %v639_v41 = vpop.f32.mrf.mxu2  ;;  %v2928_v55 = vpop.eup %2188  ;;  %v2930_v11 = vadd.f32 1.0, %v2187_v21  ;;  %v2062_v32 = vmul.f32 -1.442695, %v619_v0  ;;  %v1750_v25 = vmul.f32 %v2904_v58, %v1621_v30 }
  0xce   : > { %v2191_v27 = vpop.eup %2190  ;;  %v2940_v4 = vmul.f32 %v2928_v55, %v2862_v15  ;;  %2198 = vpow2.f32 %v2054_v28  ;;  %v640_v17 = vadd.f32 %v2718_v18, %v639_v41  ;;  %3933 = vst [vmem:[#allocation26_spill] sm:$0xff] %v2952_v9  ;;  %v2961_v41 = vmul.f32 %v2729_v29, %v1536_v44 }
  0xcf   : > { %v2944_v21 = vpop.eup %2192  ;;  %2200 = vrcp.f32 %v2930_v11  ;;  %v2947_v0 = vadd.f32 1.0, %v2191_v27  ;;  %v1782_v34 = vadd.f32 %v1750_v25, %v2754_v48  ;;  %v2969_v25 = vmul.f32 %v2729_v29, %v1531_v20 }
  0xd0   : > { %3932 = vst [vmem:[#allocation25_spill] sm:$0xff] %v2944_v21  ;;  %v2954_v30 = vpop.eup %2194  ;;  %v2958_v28 = vmul.f32 %v2944_v21, %v2880_v31  ;;  %2202 = vpow2.f32 %v2062_v32  ;;  %v2069_v16 = vmul.f32 -1.442695, %v640_v17  ;;  %vm856_vm6 = vweird.f32 %v2930_v11 }
  0xd1   : > { %3934 = vst [vmem:[#allocation27_spill] sm:$0xff] %v2961_v41  ;;  %v2197_v27 = vpop.eup %2196  ;;  %v2965_v48 = vmul.f32 %v2954_v30, %v2886_v42  ;;  %2204 = vrcp.f32 %v2947_v0  ;;  %v1814_v10 = vadd.f32 %v1782_v34, %v1358_v5  ;;  %v597_v3 = vpop.f32.mrf.mxu0  ;;  %v860_v17 = vand.u32 2147483647, %v2930_v11 }
  0xd2   : > { %3935 = vst [vmem:[#allocation28_spill] sm:$0xff] %v2969_v25  ;;  %v2971_v6 = vadd.f32 1.0, %v2197_v27  ;;  %2206 = vpow2.f32 %v2069_v16  ;;  %v598_v32 = vadd.f32 %v2718_v18, %v597_v3  ;;  %v621_v44 = vpop.f32.mrf.mxu1  ;;  %v862_v35 = vand.u32 2147483648, %v2930_v11 }
  0xd3   : > { %1846 = vst [vmem:[%s2978_s10] sm:$0xff] %v1814_v10  ;;  %v622_v20 = vadd.f32 %v2718_v18, %v621_v44  ;;  %v1551_v5 = vpop.permute.xlu1 %1550  ;;  %v1546_v34 = vpop.permute.xlu0 %1545  ;;  %vm3004_vm9 = vcmp.eq.f32.partialorder %v860_v17, 8.507059e+37  ;;  %vm842_vm2 = vweird.f32 %v2928_v55  ;;  %vm976_vm5 = vweird.f32 %v2947_v0 }
  0xd4   : > { %3936 = vst [vmem:[#allocation29_spill] sm:$0xff] %v2971_v6  ;;  %v2199_v16 = vpop.eup %2198  ;;  %2208 = vrcp.f32 %v2971_v6  ;;  %v2055_v25 = vmul.f32 -1.442695, %v598_v32  ;;  %v1633_v36 = vpop.permute.xlu2 %1632  ;;  %v2989_v44 = vmul.f32 %v2729_v29, %v1551_v5  ;;  %v2994_v3 = vmul.f32 %v2729_v29, %v1546_v34  ;;  %vm3194_vm3 = vmor %vm841_vm1, %vm842_vm2 }
  0xd5   : > { %v642_v41 = vpop.f32.mrf.mxu2  ;;  %v2201_v45 = vpop.eup %2200  ;;  %v2986_v63 = vadd.f32 1.0, %v2199_v16  ;;  %v2063_v10 = vmul.f32 -1.442695, %v622_v20  ;;  %v1753_v32 = vmul.f32 %v2904_v58, %v1633_v36 }
  0xd6   : > { %3937 = vst [vmem:[#allocation30_spill] sm:$0xff] %v2989_v44  ;;  %v2203_v27 = vpop.eup %2202  ;;  %v852_v9 = vmul.f32 %v2201_v45, %v2930_v11  ;;  %2210 = vpow2.f32 %v2055_v25  ;;  %v643_v20 = vadd.f32 %v2718_v18, %v642_v41  ;;  %vm857_vm8 = vweird.f32 %v2201_v45 }
  0xd7   : > { %3938 = vst [vmem:[#allocation31_spill] sm:$0xff] %v2994_v3  ;;  %v2997_v50 = vpop.eup %2204  ;;  %2212 = vrcp.f32 %v2986_v63  ;;  %v3000_v16 = vadd.f32 1.0, %v2203_v27  ;;  %v863_v3 = vor.u32 1.1754944e-38, %v862_v35  ;;  %vm3033_vm11 = vmor %vm856_vm6, %vm857_vm8  ;;  %v1785_v35 = vadd.f32 %v1753_v32, %v2762_v52 }
  0xd8   : > { %v2207_v5 = vpop.eup %2206  ;;  %v853_v44 = vsub.f32 1.0, %v852_v9  ;;  %2214 = vpow2.f32 %v2063_v10  ;;  %v3010_v36 = vmul.f32 %v2997_v50, %v2947_v0  ;;  %v2070_v27 = vmul.f32 -1.442695, %v643_v20 }
  0xd9   : > { %3939 = vst [vmem:[#allocation32_spill] sm:$0xff] %v3000_v16  ;;  %2216 = vrcp.f32 %v3000_v16  ;;  %v3013_v34 = vadd.f32 1.0, %v2207_v5  ;;  %v600_v41 = vpop.f32.mrf.mxu0  ;;  %vm977_vm6 = vweird.f32 %v2997_v50 }
  0xda   : > { %v3021_v17 = vpop.eup %2208  ;;  %v854_v10 = vmul.f32 %v2201_v45, %v853_v44  ;;  %v601_v62 = vadd.f32 %v2718_v18, %v600_v41  ;;  %v624_v56 = vpop.f32.mrf.mxu1  ;;  %2218 = vpow2.f32 %v2858_v7  ;;  %vm3227_vm7 = vmor %vm976_vm5, %vm977_vm6 }
  0xdb   : > { %3942 = vst [vmem:[#allocation33_spill] sm:$0xff] %v3013_v34  ;;  %v3027_v5 = vmul.f32 %v3021_v17, %v2971_v6  ;;  %2220 = vrcp.f32 %v3013_v34  ;;  %v625_v44 = vadd.f32 %v2718_v18, %v624_v56  ;;  %v1566_v41 = vpop.permute.xlu1 %1565  ;;  %v1561_v20 = vpop.permute.xlu0 %1560 }
  0xdc   : > { %3945 = vst [vmem:[#allocation34_spill] sm:$0xff] %v3021_v17  ;;  %v2211_v8 = vpop.eup %2210  ;;  %v855_v7 = vadd.f32 %v2201_v45, %v854_v10  ;;  %2222 = vpow2.f32 %v2070_v27  ;;  %v2056_v13 = vmul.f32 -1.442695, %v601_v62  ;;  %v1641_v6 = vpop.permute.xlu2 %1640  ;;  %v3053_v27 = vmul.f32 %v2729_v29, %v1566_v41 }
  0xdd   : > { %3946 = vst [vmem:[#allocation35_spill] sm:$0xff] %v3027_v5  ;;  %v3043_v11 = vpop.eup %2212  ;;  %v3046_v1 = vadd.f32 1.0, %v2211_v8  ;;  %v2064_v52 = vmul.f32 -1.442695, %v625_v44  ;;  %v645_v17 = vpop.f32.mrf.mxu2 }
  0xde   : > { %v2215_v32 = vpop.eup %2214  ;;  %v859_v62 = vsel %vm3033_vm11, %v2201_v45, %v855_v7  ;;  %2224 = vpow2.f32 %v2056_v13  ;;  %3949 = vst [vmem:[#allocation36_spill] sm:$0xff] %v3053_v27  ;;  %v3059_v8 = vmul.f32 %v3043_v11, %v2986_v63  ;;  %v1755_v7 = vmul.f32 %v2904_v58, %v1641_v6 }
  0xdf   : > { %v3055_v31 = vpop.eup %2216  ;;  %2226 = vrcp.f32 %v3046_v1  ;;  %v3062_v44 = vadd.f32 1.0, %v2215_v32  ;;  %v864_v10 = vsel %vm3004_vm9, %v863_v3, %v859_v62  ;;  %v890_v25 = vand.u32 2147483647, %v3046_v1 }
  0xe0   : > { %3950 = vst [vmem:[#allocation37_spill] sm:$0xff] %v3055_v31  ;;  %v2219_v45 = vpop.eup %2218  ;;  %v3068_v13 = vmul.f32 %v3055_v31, %v3000_v16  ;;  %v1294_v41 = vmul.f32 %v2845_v12, %v864_v10  ;;  %2228 = vpow2.f32 %v2064_v52  ;;  %v892_v3 = vand.u32 2147483648, %v3046_v1 }
  0xe1   : > { %3951 = vst [vmem:[#allocation38_spill] sm:$0xff] %v3062_v44  ;;  %v3072_v61 = vpop.eup %2220  ;;  %2230 = vrcp.f32 %v3062_v44  ;;  %v3075_v32 = vadd.f32 1.0, %v2219_v45  ;;  %v603_v62 = vpop.f32.mrf.mxu0  ;;  %v3085_v6 = vmul.f32 %v2729_v29, %v1561_v20  ;;  %vm886_vm12 = vweird.f32 %v3046_v1 }
  0xe2   : > { %3952 = vst [vmem:[#allocation39_spill] sm:$0xff] %v3068_v13  ;;  %v2223_v56 = vpop.eup %2222  ;;  %v3081_v27 = vmul.f32 %v3072_v61, %v3013_v34  ;;  %v1329_v52 = vadd.f32 %v2874_v26, %v1294_v41  ;;  %v3094_v34 = vadd.f32 %v1755_v7, %v2739_v38  ;;  %v646_v41 = vadd.f32 %v2718_v18, %v645_v17 }
  0xe3   : > { %3953 = vst [vmem:[#allocation40_spill] sm:$0xff] %v3072_v61  ;;  %v3090_v16 = vadd.f32 1.0, %v2223_v56  ;;  %2232 = vrcp.f32 %v3075_v32  ;;  %v604_v29 = vadd.f32 %v2718_v18, %v603_v62  ;;  %vm3101_vm13 = vcmp.eq.f32.partialorder %v890_v25, 8.507059e+37  ;;  %v663_v62 = vpop.f32.mrf.mxu3  ;;  %v3181_v5 = vpop.permute.xlu0 %1575 }
  0xe4   : > { %3954 = vst [vmem:[#allocation41_spill] sm:$0xff] %v3075_v32  ;;  %v2225_v31 = vpop.eup %2224  ;;  %v1361_v21 = vmul.f32 %v1329_v52, %v864_v10  ;;  %v893_v56 = vor.u32 1.1754944e-38, %v892_v3  ;;  %v2071_v17 = vmul.f32 -1.442695, %v646_v41  ;;  %v1653_v52 = vpop.permute.xlu2 %1652  ;;  %vm826_vm9 = vweird.f32 %v2805_v19 }
  0xe5   : > { %3955 = vst [vmem:[#allocation42_spill] sm:$0xff] %v3081_v27  ;;  %v2227_v20 = vpop.eup %2226  ;;  %2234 = vrcp.f32 %v3090_v16  ;;  %v2057_v25 = vmul.f32 -1.442695, %v604_v29  ;;  %v3117_v10 = vpop.permute.xlu1 %1580 }
  0xe6   : > { %3956 = vst [vmem:[#allocation43_spill] sm:$0xff] %v3085_v6  ;;  %v3099_v6 = vadd.f32 1.0, %v2225_v31  ;;  %v2229_v45 = vpop.eup %2228  ;;  %v882_v38 = vmul.f32 %v2227_v20, %v3046_v1  ;;  %v1817_v7 = vadd.f32 %v1785_v35, %v1361_v21  ;;  %vm887_vm14 = vweird.f32 %v2227_v20  ;;  %v648_v35 = vpop.f32.mrf.mxu2 }
  0xe7   : > { %v3107_v61 = vpop.eup %2230  ;;  %v3110_v31 = vadd.f32 1.0, %v2229_v45  ;;  %3959 = vst [vmem:[#allocation44_spill] sm:$0xff] %v3117_v10  ;;  %v937_v21 = vand.u32 2147483648, %v2756_v49  ;;  %v1758_v45 = vmul.f32 %v2904_v58, %v1653_v52  ;;  %v649_v29 = vadd.f32 %v2718_v18, %v648_v35  ;;  %vm3138_vm0 = vmor %vm886_vm12, %vm887_vm14 }
  0xe8   : > { %2236 = vrcp.f32 %v3099_v6  ;;  %v883_v13 = vsub.f32 1.0, %v882_v38  ;;  %v3114_v3 = vmul.f32 %v3107_v61, %v3062_v44  ;;  %1849 = vst [vmem:[%s2978_s10 + $0x18] sm:$0xff] %v1817_v7  ;;  %v664_v38 = vadd.f32 %v2718_v18, %v663_v62 }
  0xe9   : > { %2238 = vpow2.f32 %v2071_v17  ;;  %v3120_v41 = vpop.eup %2232  ;;  %v3962_v17 = vand.u32 2147483647, %v2756_v49  ;;  %v938_v62 = vor.u32 1.1754944e-38, %v937_v21  ;;  %v2072_v35 = vmul.f32 -1.442695, %v649_v29  ;;  %3968 = vst [vmem:[#allocation48_spill] sm:$0xff] %v3181_v5 }
  0xea   : > { %3960 = vst [vmem:[#allocation45_spill] sm:$0xff] %v3120_v41  ;;  %2240 = vrcp.f32 %v3110_v31  ;;  %v3128_v27 = vmul.f32 %v3120_v41, %v3075_v32  ;;  %v884_v7 = vmul.f32 %v2227_v20, %v883_v13  ;;  %v3965_v32 = vsel %vm3017_vm10, %v2809_v23, %v2926_v24 }
  0xeb   : > { %2242 = vpow2.f32 %v2057_v25  ;;  %vm936_vm15 = vcmp.eq.f32.partialorder %v3962_v17, 8.507059e+37  ;;  %v3132_v10 = vpop.eup %2234  ;;  %v1790_v25 = vadd.f32 %v1758_v45, %v2742_v39  ;;  %v2077_v17 = vmul.f32 -1.442695, %v664_v38 }
  0xec   : > { %3961 = vst [vmem:[#allocation46_spill] sm:$0xff] %v3128_v27  ;;  %2244 = vpow2.f32 %v2923_v46  ;;  %v3145_v13 = vmul.f32 %v3132_v10, %v3090_v16  ;;  %v885_v49 = vadd.f32 %v2227_v20, %v884_v7  ;;  %v939_v46 = vsel %vm936_vm15, %v938_v62, %v3965_v32 }
  0xed   : > { %2246 = vpow2.f32 %v2072_v35  ;;  %v3966_v21 = vsub.f32 1.0, %v2940_v4  ;;  %v1299_v38 = vmul.f32 %v2845_v12, %v939_v46  ;;  %vm827_vm10 = vweird.f32 %v2860_v14 }
  0xee   : > { %v3148_v44 = vpop.eup %2236  ;;  %v889_v45 = vsel %vm3138_vm0, %v2227_v20, %v885_v49  ;;  %2248 = vpow2.f32 %v2077_v17  ;;  %vm3274_vm11 = vmor %vm826_vm9, %vm827_vm10  ;;  %vm872_vm14 = vweird.f32 %v3043_v11  ;;  %vm1021_vm1 = vweird.f32 %v3110_v31 }
  0xef   : > { %v839_v29 = vmul.f32 %v2928_v55, %v3966_v21  ;;  %v2239_v41 = vpop.eup %2238  ;;  %v3161_v39 = vmul.f32 %v3148_v44, %v3099_v6  ;;  %v894_v23 = vsel %vm3101_vm13, %v893_v56, %v889_v45  ;;  %v1334_v62 = vadd.f32 %v2874_v26, %v1299_v38  ;;  %v1629_v45 = vpop.permute.xlu1 %1628 }
  0xf0   : > { %v3167_v9 = vpop.eup %2240  ;;  %v3171_v24 = vadd.f32 1.0, %v2239_v41  ;;  %v1296_v20 = vmul.f32 %v2845_v12, %v894_v23  ;;  %v845_v56 = vand.u32 2147483647, %v2862_v15  ;;  %v1752_v27 = vmul.f32 %v2904_v58, %v1629_v45 }
  0xf1   : > { %v840_v4 = vadd.f32 %v2928_v55, %v839_v29  ;;  %v2243_v32 = vpop.eup %2242  ;;  %v3187_v41 = vmul.f32 %v3167_v9, %v3110_v31  ;;  %v1366_v29 = vmul.f32 %v1334_v62, %v939_v46  ;;  %v847_v46 = vand.u32 2147483648, %v2862_v15 }
  0xf2   : > { %3967 = vst [vmem:[#allocation47_spill] sm:$0xff] %v3171_v24  ;;  %v2245_v35 = vpop.eup %2244  ;;  %2250 = vrcp.f32 %v3171_v24  ;;  %v3179_v49 = vadd.f32 1.0, %v2243_v32  ;;  %v1331_v17 = vadd.f32 %v2874_v26, %v1296_v20  ;;  %vm3202_vm4 = vcmp.eq.f32.partialorder %v845_v56, 8.507059e+37  ;;  %v666_v56 = vpop.f32.mrf.mxu3 }
  0xf3   : > { %v3190_v21 = vadd.f32 1.0, %v2245_v35  ;;  %v2247_v32 = vpop.eup %2246  ;;  %v844_v1 = vsel %vm3194_vm3, %v2928_v55, %v840_v4  ;;  %v1822_v35 = vadd.f32 %v1790_v25, %v1366_v29  ;;  %v848_v5 = vor.u32 1.1754944e-38, %v847_v46  ;;  %v1665_v25 = vpop.permute.xlu2 %1664 }
  0xf4   : > { %2252 = vrcp.f32 %v3179_v49  ;;  %v1363_v62 = vmul.f32 %v1331_v17, %v894_v23  ;;  %v3208_v7 = vadd.f32 1.0, %v2247_v32  ;;  %v2249_v52 = vpop.eup %2248  ;;  %v3974_v38 = vsub.f32 1.0, %v3010_v36 }
  0xf5   : > { %2254 = vrcp.f32 %v3190_v21  ;;  %1854 = vst [vmem:[%s2978_s10 + $0x40] sm:$0xff] %v1822_v35  ;;  %v3218_v15 = vadd.f32 1.0, %v2249_v52  ;;  %v849_v36 = vsel %vm3202_vm4, %v848_v5, %v844_v1  ;;  %v982_v32 = vand.u32 2147483648, %v2947_v0 }
  0xf6   : > { %3973 = vst [vmem:[#allocation49_spill] sm:$0xff] %v3208_v7  ;;  %v974_v55 = vmul.f32 %v2997_v50, %v3974_v38  ;;  %v1819_v4 = vadd.f32 %v3094_v34, %v1363_v62  ;;  %2256 = vrcp.f32 %v3208_v7  ;;  %v980_v34 = vand.u32 2147483647, %v2947_v0 }
  0xf7   : > { %2258 = vrcp.f32 %v3218_v15  ;;  %v1293_v45 = vmul.f32 %v2845_v12, %v849_v36  ;;  %v1761_v20 = vmul.f32 %v2904_v58, %v1665_v25  ;;  %v3978_v46 = vsub.f32 1.0, %v2868_v22  ;;  %v1625_v22 = vpop.permute.xlu0 %1624 }
  0xf8   : > { %v3221_v23 = vpop.eup %2250  ;;  %v975_v17 = vadd.f32 %v2997_v50, %v974_v55  ;;  %1851 = vst [vmem:[%s2978_s10 + $0x28] sm:$0xff] %v1819_v4  ;;  %vm981_vm8 = vcmp.eq.f32.partialorder %v980_v34, 8.507059e+37  ;;  %v1784_v55 = vadd.f32 %v1752_v27, %v2751_v47  ;;  %v983_v4 = vor.u32 1.1754944e-38, %v982_v32 }
  0xf9   : > { %3975 = vst [vmem:[#allocation50_spill] sm:$0xff] %v3221_v23  ;;  %v3235_v52 = vmul.f32 %v3221_v23, %v3171_v24  ;;  %v824_v62 = vmul.f32 %v2860_v14, %v3978_v46  ;;  %v1328_v0 = vadd.f32 %v2874_v26, %v1293_v45  ;;  %v1793_v45 = vadd.f32 %v1761_v20, %v2745_v43 }
  0xfa   : > { %v3240_v1 = vpop.eup %2252  ;;  %v979_v5 = vsel %vm3227_vm7, %v2997_v50, %v975_v17  ;;  %v832_v50 = vand.u32 2147483648, %v2805_v19  ;;  %v1751_v47 = vmul.f32 %v2904_v58, %v1625_v22  ;;  %v3982_v20 = vsub.f32 1.0, %v3059_v8 }
  0xfb   : > { %v3249_v35 = vpop.eup %2254  ;;  %v3253_v38 = vmul.f32 %v3240_v1, %v3179_v49  ;;  %v825_v17 = vadd.f32 %v2860_v14, %v824_v62  ;;  %v1360_v34 = vmul.f32 %v1328_v0, %v849_v36  ;;  %v984_v46 = vsel %vm981_vm8, %v983_v4, %v979_v5  ;;  %v627_v5 = vpop.f32.mrf.mxu1 }
  0xfc   : > { %v3260_v25 = vmul.f32 %v3249_v35, %v3190_v21  ;;  %v3264_v29 = vpop.eup %2256  ;;  %v1302_v32 = vmul.f32 %v2845_v12, %v984_v46  ;;  %v830_v36 = vand.u32 2147483647, %v2805_v19  ;;  %v651_v0 = vpop.f32.mrf.mxu2  ;;  %v628_v19 = vadd.f32 %v2718_v18, %v627_v5 }
  0xfd   : > { %3979 = vst [vmem:[#allocation51_spill] sm:$0xff] %v3264_v29  ;;  %v3271_v27 = vmul.f32 %v3264_v29, %v3208_v7  ;;  %v3279_v43 = vpop.eup %2258  ;;  %v1816_v4 = vadd.f32 %v1784_v55, %v1360_v34  ;;  %v829_v24 = vsel %vm3274_vm11, %v2860_v14, %v825_v17  ;;  %v833_v55 = vor.u32 1.1754944e-38, %v832_v50 }
  0xfe   : > { %v1337_v29 = vadd.f32 %v2874_v26, %v1302_v32  ;;  %vm831_vm12 = vcmp.eq.f32.partialorder %v830_v36, 8.507059e+37  ;;  %v3291_v23 = vmul.f32 %v3279_v43, %v3218_v15  ;;  %v652_v22 = vadd.f32 %v2718_v18, %v651_v0 }
  0xff   : > { %1848 = vst [vmem:[%s2978_s10 + $0x10] sm:$0xff] %v1816_v4  ;;  %v1783_v7 = vadd.f32 %v1751_v47, %v2766_v54  ;;  %v667_v32 = vadd.f32 %v2718_v18, %v666_v56  ;;  %v869_v14 = vmul.f32 %v3043_v11, %v3982_v20  ;;  %v834_v17 = vsel %vm831_vm12, %v833_v55, %v829_v24  ;;  %v1637_v54 = vpop.permute.xlu1 %1636  ;;  %v1677_v20 = vpop.permute.xlu2 %1676 }
 0x100   : > { %v1369_v34 = vmul.f32 %v1337_v29, %v984_v46  ;;  %v2065_v62 = vmul.f32 -1.442695, %v628_v19  ;;  %v2073_v36 = vmul.f32 -1.442695, %v652_v22  ;;  %vm871_vm13 = vweird.f32 %v2986_v63 }
 0x101   : > { %v1292_v5 = vmul.f32 %v2845_v12, %v834_v17  ;;  %v2078_v4 = vmul.f32 -1.442695, %v667_v32  ;;  %v870_v29 = vadd.f32 %v3043_v11, %v869_v14  ;;  %v875_v18 = vand.u32 2147483647, %v2986_v63  ;;  %vm873_vm15 = vmor %vm871_vm13, %vm872_vm14 }
 0x102   : > { %v1825_v50 = vadd.f32 %v1793_v45, %v1369_v34  ;;  %2260 = vpow2.f32 %v2065_v62  ;;  %v877_v8 = vand.u32 2147483648, %v2986_v63  ;;  %v1213_v24 = vsub.f32 1.0, %v3291_v23 }
 0x103   : > { %v1327_v56 = vadd.f32 %v2874_v26, %v1292_v5  ;;  %2262 = vpow2.f32 %v2073_v36  ;;  %v3983_v46 = vsub.f32 1.0, %v3187_v41  ;;  %v874_v47 = vsel %vm873_vm15, %v3043_v11, %v870_v29 }
 0x104   : > { %1857 = vst [vmem:[%s2978_s10 + $0x58] sm:$0xff] %v1825_v50  ;;  %2264 = vpow2.f32 %v2078_v4  ;;  %vm876_vm0 = vcmp.eq.f32.partialorder %v875_v18, 8.507059e+37  ;;  %v878_v0 = vor.u32 1.1754944e-38, %v877_v8  ;;  %v1754_v63 = vmul.f32 %v2904_v58, %v1637_v54 }
 0x105   : > { %v1019_v45 = vmul.f32 %v3167_v9, %v3983_v46  ;;  %v1359_v55 = vmul.f32 %v1327_v56, %v834_v17  ;;  %vm1022_vm2 = vweird.f32 %v3167_v9  ;;  %v1025_v41 = vand.u32 2147483647, %v3110_v31 }
 0x106   : > { %v879_v22 = vsel %vm876_vm0, %v878_v0, %v874_v47  ;;  %v1027_v34 = vand.u32 2147483648, %v3110_v31  ;;  %vm3321_vm3 = vmor %vm1021_vm1, %vm1022_vm2  ;;  %v1764_v17 = vmul.f32 %v2904_v58, %v1677_v20  ;;  %v3986_v62 = vsub.f32 1.0, %v3161_v39  ;;  %v669_v0 = vpop.f32.mrf.mxu3 }
 0x107   : > { %v1020_v19 = vadd.f32 %v3167_v9, %v1019_v45  ;;  %v1815_v32 = vadd.f32 %v1783_v7, %v1359_v55  ;;  %v1295_v11 = vmul.f32 %v2845_v12, %v879_v22  ;;  %vm1026_vm4 = vcmp.eq.f32.partialorder %v1025_v41, 8.507059e+37  ;;  %v1645_v55 = vpop.permute.xlu0 %1644  ;;  %v1649_v14 = vpop.permute.xlu1 %1648 }
 0x108   : > { %v899_v36 = vmul.f32 %v3148_v44, %v3986_v62  ;;  %v2261_v50 = vpop.eup %2260  ;;  %v1028_v31 = vor.u32 1.1754944e-38, %v1027_v34  ;;  %vm901_vm5 = vweird.f32 %v3099_v6  ;;  %v1786_v54 = vadd.f32 %v1754_v63, %v2736_v37 }
 0x109   : > { %v1024_v5 = vsel %vm3321_vm3, %v3167_v9, %v1020_v19  ;;  %v2263_v7 = vpop.eup %2262  ;;  %1847 = vst [vmem:[%s2978_s10 + $0x8] sm:$0xff] %v1815_v32  ;;  %v3334_v4 = vadd.f32 1.0, %v2261_v50  ;;  %v1330_v29 = vadd.f32 %v2874_v26, %v1295_v11  ;;  %vm902_vm6 = vweird.f32 %v3148_v44  ;;  %v3362_v32 = vld [vmem:[%s2518_s27] ss:$0 sm:$0xff]  ;;  %s2317_s27 = scalar_lea.hbm %s2316_s30, 256 }
 0x10a   : > { %v900_v39 = vadd.f32 %v3148_v44, %v899_v36  ;;  %v2265_v18 = vpop.eup %2264  ;;  %v3339_v8 = vadd.f32 1.0, %v2263_v7  ;;  %v1029_v56 = vsel %vm1026_vm4, %v1028_v31, %v1024_v5  ;;  %v905_v9 = vand.u32 2147483647, %v3099_v6  ;;  %vm3349_vm7 = vmor %vm901_vm5, %vm902_vm6  ;;  %p2318_p1 = scmp.ne.s32.totalorder %s2316_s30, %s2317_s27  ;;  %p2323_p7 = scmp.lt.s32.totalorder %s2321_s17, %s2317_s27 }
 0x10b   : > { %2266 = vrcp.f32 %v3334_v4  ;;  %v3344_v46 = vadd.f32 1.0, %v2265_v18  ;;  %v1362_v45 = vmul.f32 %v1330_v29, %v879_v22  ;;  %v1305_v47 = vmul.f32 %v2845_v12, %v1029_v56 }
 0x10c   : > { %2268 = vrcp.f32 %v3339_v8  ;;  %v1796_v20 = vadd.f32 %v1764_v17, %v2759_v51  ;;  %v904_v63 = vsel %vm3349_vm7, %v3148_v44, %v900_v39  ;;  %v907_v19 = vand.u32 2147483648, %v3099_v6  ;;  %p2319_p2 = pnand %p2318_p1, %p2463_p5  ;;  %p2324_p8 = por %p2323_p7, %p2322_p4 }
 0x10d   : > { %2270 = vrcp.f32 %v3344_v46  ;;  %v1818_v22 = vadd.f32 %v1786_v54, %v1362_v45  ;;  %v1340_v41 = vadd.f32 %v2874_v26, %v1305_v47  ;;  %vm906_vm8 = vcmp.eq.f32.partialorder %v905_v9, 8.507059e+37 }
 0x10e   : > { %v908_v34 = vor.u32 1.1754944e-38, %v907_v19  ;;  %v670_v11 = vadd.f32 %v3362_v32, %v669_v0  ;;  %v3989_v51 = vsub.f32 1.0, %v3253_v38  ;;  %vm916_vm9 = vweird.f32 %v3179_v49  ;;  %p2320_p3 = pneg %p2319_p2 }
 0x10f   : > { %1850 = vst [vmem:[%s2978_s10 + $0x20] sm:$0xff] %v1818_v22  ;;  %v1372_v44 = vmul.f32 %v1340_v41, %v1029_v56  ;;  %v1756_v6 = vmul.f32 %v2904_v58, %v1645_v55  ;;  %vm917_vm10 = vweird.f32 %v3240_v1  ;;  %v920_v62 = vand.u32 2147483647, %v3179_v49  ;;  %v1689_v22 = vpop.permute.xlu2 %1688  ;;  %v1657_v31 = vpop.permute.xlu0 %1656 }
 0x110   : > { %v914_v17 = vmul.f32 %v3240_v1, %v3989_v51  ;;  %v909_v36 = vsel %vm906_vm8, %v908_v34, %v904_v63  ;;  %v2079_v50 = vmul.f32 -1.442695, %v670_v11  ;;  %vm3374_vm11 = vmor %vm916_vm9, %vm917_vm10  ;;  %v922_v38 = vand.u32 2147483648, %v3179_v49  ;;  %p2325_p9 = pnand %p2324_p8, %p2320_p3 }
 0x111   : > { %v3379_v7 = vpop.eup %2266  ;;  %v1828_v29 = vadd.f32 %v1796_v20, %v1372_v44  ;;  %v1297_v54 = vmul.f32 %v2845_v12, %v909_v36  ;;  %vm921_vm12 = vcmp.eq.f32.partialorder %v920_v62, 8.507059e+37  ;;  %v1757_v39 = vmul.f32 %v2904_v58, %v1649_v14 }
 0x112   : > { %v915_v5 = vadd.f32 %v3240_v1, %v914_v17  ;;  %v3383_v18 = vpop.eup %2268  ;;  %v3387_v56 = vmul.f32 %v3379_v7, %v3334_v4  ;;  %2272 = vpow2.f32 %v2079_v50  ;;  %v923_v49 = vor.u32 1.1754944e-38, %v922_v38 }
 0x113   : > { %v3392_v45 = vpop.eup %2270  ;;  %v3396_v47 = vmul.f32 %v3383_v18, %v3339_v8  ;;  %1860 = vst [vmem:[%s2978_s10 + $0x70] sm:$0xff] %v1828_v29  ;;  %v1332_v37 = vadd.f32 %v2874_v26, %v1297_v54  ;;  %v1788_v0 = vadd.f32 %v1756_v6, %v2777_v60  ;;  %v3992_v20 = vsub.f32 1.0, %v2965_v48 }
 0x114   : > { %v919_v9 = vsel %vm3374_vm11, %v3240_v1, %v915_v5  ;;  %v1033_v63 = vsub.f32 1.0, %v3387_v56  ;;  %v1789_v1 = vadd.f32 %v1757_v39, %v2774_v59  ;;  %vm1066_vm13 = vweird.f32 %v2886_v42  ;;  %v672_v39 = vpop.f32.mrf.mxu3 }
 0x115   : > { %v1064_v55 = vmul.f32 %v2954_v30, %v3992_v20  ;;  %v924_v19 = vsel %vm921_vm12, %v923_v49, %v919_v9  ;;  %v3409_v41 = vmul.f32 %v3392_v45, %v3344_v46  ;;  %v1364_v34 = vmul.f32 %v1332_v37, %v909_v36 }
 0x116   : > { %v1298_v11 = vmul.f32 %v2845_v12, %v924_v19  ;;  %v1153_v48 = vsub.f32 1.0, %v3396_v47  ;;  %vm1067_vm14 = vweird.f32 %v2954_v30  ;;  %v1070_v14 = vand.u32 2147483647, %v2886_v42 }
 0x117   : > { %v1065_v60 = vadd.f32 %v2954_v30, %v1064_v55  ;;  %v1072_v59 = vand.u32 2147483648, %v2886_v42  ;;  %v1820_v51 = vadd.f32 %v1788_v0, %v1364_v34  ;;  %vm3418_vm15 = vmor %vm1066_vm13, %vm1067_vm14  ;;  %v1767_v6 = vmul.f32 %v2904_v58, %v1689_v22 }
 0x118   : > { %v1333_v17 = vadd.f32 %v2874_v26, %v1298_v11  ;;  %v3995_v62 = vsub.f32 1.0, %v2894_v53  ;;  %v2273_v50 = vpop.eup %2272  ;;  %vm1071_vm0 = vcmp.eq.f32.partialorder %v1070_v14, 8.507059e+37  ;;  %vm946_vm1 = vweird.f32 %v2822_v33  ;;  %v3998_v14 = vld [vmem:[#allocation19_spill] sm:$0xff] }
 0x119   : > { %v1069_v5 = vsel %vm3418_vm15, %v2954_v30, %v1065_v60  ;;  %v1073_v42 = vor.u32 1.1754944e-38, %v1072_v59  ;;  %1852 = vst [vmem:[%s2978_s10 + $0x30] sm:$0xff] %v1820_v51  ;;  %v3431_v38 = vadd.f32 1.0, %v2273_v50  ;;  %v1799_v54 = vadd.f32 %v1767_v6, %v2769_v57 }
 0x11a   : > { %v944_v36 = vmul.f32 %v2884_v40, %v3995_v62  ;;  %v1365_v29 = vmul.f32 %v1333_v17, %v924_v19  ;;  %vm947_vm2 = vweird.f32 %v2884_v40  ;;  %v950_v30 = vand.u32 2147483647, %v2822_v33 }
 0x11b   : > { %v1074_v9 = vsel %vm1071_vm0, %v1073_v42, %v1069_v5  ;;  %v952_v49 = vand.u32 2147483648, %v2822_v33  ;;  %2274 = vrcp.f32 %v3431_v38  ;;  %vm948_vm3 = vmor %vm946_vm1, %vm947_vm2  ;;  %v1759_v20 = vmul.f32 %v2904_v58, %v1657_v31  ;;  %v1661_v33 = vpop.permute.xlu1 %1660 }
 0x11c   : > { %v945_v53 = vadd.f32 %v2884_v40, %v944_v36  ;;  %v1821_v37 = vadd.f32 %v1789_v1, %v1365_v29  ;;  %v1308_v0 = vmul.f32 %v2845_v12, %v1074_v9  ;;  %vm951_vm4 = vcmp.eq.f32.partialorder %v950_v30, 8.507059e+37  ;;  %v3997_v1 = vld [vmem:[#allocation25_spill] sm:$0xff] }
 0x11d   : > { %v953_v55 = vor.u32 1.1754944e-38, %v952_v49  ;;  %v673_v19 = vadd.f32 %v3362_v32, %v672_v39  ;;  %v1791_v34 = vadd.f32 %v1759_v20, %v2791_v2  ;;  %v3996_v11 = vsub.f32 1.0, %v2958_v28  ;;  %v3480_v49 = vld [vmem:[%s2603_s12] ss:$0 sm:$0xff] }
 0x11e   : > { %v949_v57 = vsel %vm948_vm3, %v2884_v40, %v945_v53  ;;  %1853 = vst [vmem:[%s2978_s10 + $0x38] sm:$0xff] %v1821_v37  ;;  %v1343_v22 = vadd.f32 %v2874_v26, %v1308_v0  ;;  %vm961_vm5 = vweird.f32 %v3998_v14  ;;  %vm962_vm6 = vweird.f32 %v3997_v1  ;;  %v1701_v53 = vpop.permute.xlu2 %1700  ;;  %v4002_v0 = vld [vmem:[#allocation9_spill] sm:$0xff] }
 0x11f   : > { %v959_v60 = vmul.f32 %v3997_v1, %v3996_v11  ;;  %v954_v59 = vsel %vm951_vm4, %v953_v55, %v949_v57  ;;  %v2080_v51 = vmul.f32 -1.442695, %v673_v19  ;;  %v965_v40 = vand.u32 2147483647, %v3998_v14  ;;  %vm3454_vm7 = vmor %vm961_vm5, %vm962_vm6 }
 0x120   : > { %v1375_v17 = vmul.f32 %v1343_v22, %v1074_v9  ;;  %v1300_v44 = vmul.f32 %v2845_v12, %v954_v59  ;;  %v967_v28 = vand.u32 2147483648, %v3998_v14  ;;  %v1760_v62 = vmul.f32 %v2904_v58, %v1661_v33  ;;  %v4009_v14 = vld [vmem:[#allocation37_spill] sm:$0xff] }
 0x121   : > { %v960_v6 = vadd.f32 %v3997_v1, %v959_v60  ;;  %2276 = vpow2.f32 %v2080_v51  ;;  %vm966_vm8 = vcmp.eq.f32.partialorder %v965_v40, 8.507059e+37  ;;  %v4001_v36 = vsub.f32 1.0, %v3145_v13  ;;  %v3463_v5 = vpop.eup %2274 }
 0x122   : > { %v1831_v12 = vadd.f32 %v1799_v54, %v1375_v17  ;;  %v1335_v42 = vadd.f32 %v2874_v26, %v1300_v44  ;;  %v968_v29 = vor.u32 1.1754944e-38, %v967_v28  ;;  %v1228_v39 = vsub.f32 1.0, %v3409_v41  ;;  %v3502_v17 = vld [vmem:[%s2609_s20] ss:$0 sm:$0xff]  ;;  %v1669_v44 = vpop.permute.xlu0 %1668  ;;  %v675_v28 = vpop.f32.mrf.mxu3 }
 0x123   : > { %v1109_v50 = vmul.f32 %v3132_v10, %v4001_v36  ;;  %v964_v31 = vsel %vm3454_vm7, %v3997_v1, %v960_v6  ;;  %v3472_v9 = vmul.f32 %v3463_v5, %v3431_v38  ;;  %vm1111_vm9 = vweird.f32 %v3090_v16  ;;  %v4007_v1 = vld [vmem:[#allocation39_spill] sm:$0xff] }
 0x124   : > { %1863 = vst [vmem:[%s2978_s10 + $0x88] sm:$0xff] %v1831_v12  ;;  %v1367_v54 = vmul.f32 %v1335_v42, %v954_v59  ;;  %v969_v26 = vsel %vm966_vm8, %v968_v29, %v964_v31  ;;  %vm1112_vm10 = vweird.f32 %v3132_v10  ;;  %v1115_v30 = vand.u32 2147483647, %v3090_v16 }
 0x125   : > { %v1110_v13 = vadd.f32 %v3132_v10, %v1109_v50  ;;  %v1301_v37 = vmul.f32 %v3480_v49, %v969_v26  ;;  %v1792_v20 = vadd.f32 %v1760_v62, %v4002_v0  ;;  %vm3484_vm11 = vmor %vm1111_vm9, %vm1112_vm10  ;;  %v1117_v55 = vand.u32 2147483648, %v3090_v16  ;;  %v4011_v50 = vld [vmem:[#allocation8_spill] sm:$0xff]  ;;  %v1673_v0 = vpop.permute.xlu1 %1672 }
 0x126   : > { %v1770_v19 = vmul.f32 %v2904_v58, %v1701_v53  ;;  %v1823_v22 = vadd.f32 %v1791_v34, %v1367_v54  ;;  %vm3493_vm12 = vcmp.eq.f32.partialorder %v1115_v30, 8.507059e+37  ;;  %v4008_v60 = vsub.f32 1.0, %v4007_v1  ;;  %v4010_v34 = vld [vmem:[#allocation32_spill] sm:$0xff] }
 0x127   : > { %v1114_v33 = vsel %vm3484_vm11, %v3132_v10, %v1110_v13  ;;  %v2277_v51 = vpop.eup %2276  ;;  %v1243_v40 = vsub.f32 1.0, %v3472_v9  ;;  %v1336_v58 = vadd.f32 %v3502_v17, %v1301_v37  ;;  %v1118_v16 = vor.u32 1.1754944e-38, %v1117_v55 }
 0x128   : > { %v989_v59 = vmul.f32 %v4009_v14, %v4008_v60  ;;  %vm991_vm13 = vweird.f32 %v4010_v34  ;;  %1855 = vst [vmem:[%s2978_s10 + $0x48] sm:$0xff] %v1823_v22  ;;  %v3507_v10 = vadd.f32 1.0, %v2277_v51  ;;  %vm992_vm14 = vweird.f32 %v4009_v14  ;;  %v4015_v22 = vld [vmem:[#allocation38_spill] sm:$0xff] }
 0x129   : > { %v995_v2 = vand.u32 2147483647, %v4010_v34  ;;  %v1368_v62 = vmul.f32 %v1336_v58, %v969_v26  ;;  %v1119_v36 = vsel %vm3493_vm12, %v1118_v16, %v1114_v33  ;;  %v1802_v12 = vadd.f32 %v1770_v19, %v4011_v50  ;;  %vm3515_vm15 = vmor %vm991_vm13, %vm992_vm14  ;;  %v3528_v26 = vld [vmem:[%s3862_s7] ss:$0 sm:$0xff] }
 0x12a   : > { %v990_v6 = vadd.f32 %v4009_v14, %v989_v59  ;;  %v997_v31 = vand.u32 2147483648, %v4010_v34  ;;  %2278 = vrcp.f32 %v3507_v10  ;;  %v1311_v29 = vmul.f32 %v3480_v49, %v1119_v36 }
 0x12b   : > { %vm996_vm0 = vcmp.eq.f32.partialorder %v995_v2, 8.507059e+37  ;;  %v1824_v13 = vadd.f32 %v1792_v20, %v1368_v62  ;;  %v1762_v30 = vmul.f32 %v3528_v26, %v1669_v44  ;;  %v676_v37 = vadd.f32 %v3362_v32, %v675_v28  ;;  %v1713_v62 = vpop.permute.xlu2 %1712 }
 0x12c   : > { %v994_v53 = vsel %vm3515_vm15, %v4009_v14, %v990_v6  ;;  %v998_v54 = vor.u32 1.1754944e-38, %v997_v31  ;;  %v1346_v57 = vadd.f32 %v3502_v17, %v1311_v29  ;;  %v4014_v55 = vsub.f32 1.0, %v3114_v3  ;;  %v4018_v6 = vld [vmem:[#allocation12_spill] sm:$0xff]  ;;  %v4019_v31 = vld [vmem:[#allocation11_spill] sm:$0xff] }
 0x12d   : > { %vm1006_vm1 = vweird.f32 %v4015_v22  ;;  %vm1007_vm2 = vweird.f32 %v3107_v61  ;;  %1856 = vst [vmem:[%s2978_s10 + $0x50] sm:$0xff] %v1824_v13  ;;  %v2081_v33 = vmul.f32 -1.442695, %v676_v37  ;;  %v1010_v32 = vand.u32 2147483647, %v4015_v22 }
 0x12e   : > { %v1004_v19 = vmul.f32 %v3107_v61, %v4014_v55  ;;  %v999_v20 = vsel %vm996_vm0, %v998_v54, %v994_v53  ;;  %vm3539_vm3 = vmor %vm1006_vm1, %vm1007_vm2  ;;  %v1012_v1 = vand.u32 2147483648, %v4015_v22  ;;  %v1378_v60 = vmul.f32 %v1346_v57, %v1119_v36  ;;  %v1681_v22 = vpop.permute.xlu0 %1680 }
 0x12f   : > { %v1303_v3 = vmul.f32 %v3480_v49, %v999_v20  ;;  %v1763_v59 = vmul.f32 %v3528_v26, %v1673_v0  ;;  %2280 = vpow2.f32 %v2081_v33  ;;  %vm1011_vm4 = vcmp.eq.f32.partialorder %v1010_v32, 8.507059e+37  ;;  %v4022_v33 = vld [vmem:[#allocation10_spill] sm:$0xff] }
 0x130   : > { %v1005_v14 = vadd.f32 %v3107_v61, %v1004_v19  ;;  %v1013_v51 = vor.u32 1.1754944e-38, %v1012_v1  ;;  %v1154_v58 = vmul.f32 %v3383_v18, %v1153_v48  ;;  %v3551_v16 = vpop.eup %2278  ;;  %v1834_v34 = vadd.f32 %v1802_v12, %v1378_v60  ;;  %v4025_v60 = vld [vmem:[#allocation22_spill] sm:$0xff] }
 0x131   : > { %v1338_v44 = vadd.f32 %v3502_v17, %v1303_v3  ;;  %v1794_v2 = vadd.f32 %v1762_v30, %v4018_v6  ;;  %v3560_v36 = vmul.f32 %v3551_v16, %v3507_v10  ;;  %vm1156_vm5 = vweird.f32 %v3339_v8 }
 0x132   : > { %v1009_v28 = vsel %vm3539_vm3, %v3107_v61, %v1005_v14  ;;  %v1155_v47 = vadd.f32 %v3383_v18, %v1154_v58  ;;  %1866 = vst [vmem:[%s2978_s10 + $0xa0] sm:$0xff] %v1834_v34  ;;  %vm1157_vm6 = vweird.f32 %v3383_v18  ;;  %v1160_v42 = vand.u32 2147483647, %v3339_v8  ;;  %v4027_v14 = vld [vmem:[#allocation20_spill] sm:$0xff] }
 0x133   : > { %v1014_v50 = vsel %vm1011_vm4, %v1013_v51, %v1009_v28  ;;  %v1370_v48 = vmul.f32 %v1338_v44, %v999_v20  ;;  %v1795_v61 = vadd.f32 %v1763_v59, %v4019_v31  ;;  %vm3569_vm7 = vmor %vm1156_vm5, %vm1157_vm6  ;;  %v1162_v53 = vand.u32 2147483648, %v3339_v8  ;;  %v1685_v44 = vpop.permute.xlu1 %1684 }
 0x134   : > { %v1304_v12 = vmul.f32 %v3480_v49, %v1014_v50  ;;  %v1773_v13 = vmul.f32 %v3528_v26, %v1713_v62  ;;  %v1034_v54 = vmul.f32 %v3379_v7, %v1033_v63  ;;  %v1159_v0 = vsel %vm3569_vm7, %v3383_v18, %v1155_v47  ;;  %v4028_v62 = vld [vmem:[#allocation13_spill] sm:$0xff] }
 0x135   : > { %v1826_v30 = vadd.f32 %v1794_v2, %v1370_v48  ;;  %vm1161_vm8 = vcmp.eq.f32.partialorder %v1160_v42, 8.507059e+37  ;;  %v2281_v57 = vpop.eup %2280  ;;  %v1258_v55 = vsub.f32 1.0, %v3560_v36  ;;  %v1163_v19 = vor.u32 1.1754944e-38, %v1162_v53 }
 0x136   : > { %v1339_v37 = vadd.f32 %v3502_v17, %v1304_v12  ;;  %v1035_v8 = vadd.f32 %v3379_v7, %v1034_v54  ;;  %vm1036_vm9 = vweird.f32 %v3334_v4  ;;  %v3586_v56 = vadd.f32 1.0, %v2281_v57  ;;  %v1693_v32 = vpop.permute.xlu0 %1692 }
 0x137   : > { %1858 = vst [vmem:[%s2978_s10 + $0x60] sm:$0xff] %v1826_v30  ;;  %vm1037_vm10 = vweird.f32 %v3379_v7  ;;  %v1040_v20 = vand.u32 2147483647, %v3334_v4  ;;  %v1164_v18 = vsel %vm1161_vm8, %v1163_v19, %v1159_v0  ;;  %v1805_v11 = vadd.f32 %v1773_v13, %v4022_v33  ;;  %v4032_v13 = vld [vmem:[#allocation16_spill] sm:$0xff]  ;;  %v1725_v19 = vpop.permute.xlu2 %1724 }
 0x138   : > { %v1371_v63 = vmul.f32 %v1339_v37, %v1014_v50  ;;  %vm3591_vm11 = vmor %vm1036_vm9, %vm1037_vm10  ;;  %v1042_v1 = vand.u32 2147483648, %v3334_v4  ;;  %v4026_v3 = vsub.f32 1.0, %v4025_v60  ;;  %2282 = vrcp.f32 %v3586_v56 }
 0x139   : > { %v1314_v58 = vmul.f32 %v3480_v49, %v1164_v18  ;;  %v1039_v34 = vsel %vm3591_vm11, %v3379_v7, %v1035_v8  ;;  %vm1041_vm12 = vcmp.eq.f32.partialorder %v1040_v20, 8.507059e+37  ;;  %v1765_v2 = vmul.f32 %v3528_v26, %v1681_v22  ;;  %v4033_v20 = vld [vmem:[#allocation15_spill] sm:$0xff] }
 0x13a   : > { %v1049_v59 = vmul.f32 %v4027_v14, %v4026_v3  ;;  %v1827_v51 = vadd.f32 %v1795_v61, %v1371_v63  ;;  %v1043_v6 = vor.u32 1.1754944e-38, %v1042_v1  ;;  %vm1051_vm13 = vweird.f32 %v4028_v62 }
 0x13b   : > { %v1349_v28 = vadd.f32 %v3502_v17, %v1314_v58  ;;  %vm1052_vm14 = vweird.f32 %v4027_v14  ;;  %v1055_v50 = vand.u32 2147483647, %v4028_v62  ;;  %v1057_v7 = vand.u32 2147483648, %v4028_v62  ;;  %v4036_v58 = vld [vmem:[#allocation35_spill] sm:$0xff]  ;;  %v1697_v48 = vpop.permute.xlu1 %1696 }
 0x13c   : > { %v1050_v4 = vadd.f32 %v4027_v14, %v1049_v59  ;;  %1859 = vst [vmem:[%s2978_s10 + $0x68] sm:$0xff] %v1827_v51  ;;  %v1044_v47 = vsel %vm1041_vm12, %v1043_v6, %v1039_v34  ;;  %vm3611_vm15 = vmor %vm1051_vm13, %vm1052_vm14  ;;  %v1766_v12 = vmul.f32 %v3528_v26, %v1685_v44  ;;  %v4031_v42 = vsub.f32 1.0, %v3260_v25  ;;  %v4038_v44 = vld [vmem:[#allocation34_spill] sm:$0xff] }
 0x13d   : > { %v1381_v61 = vmul.f32 %v1349_v28, %v1164_v18  ;;  %v1306_v29 = vmul.f32 %v3480_v49, %v1044_v47  ;;  %vm1056_vm0 = vcmp.eq.f32.partialorder %v1055_v50, 8.507059e+37  ;;  %v1797_v54 = vadd.f32 %v1765_v2, %v4032_v13 }
 0x13e   : > { %v1199_v31 = vmul.f32 %v3249_v35, %v4031_v42  ;;  %v1054_v53 = vsel %vm3611_vm15, %v4027_v14, %v1050_v4  ;;  %v1058_v30 = vor.u32 1.1754944e-38, %v1057_v7  ;;  %vm1201_vm1 = vweird.f32 %v3190_v21  ;;  %v3627_v0 = vpop.eup %2282  ;;  %v4039_v4 = vld [vmem:[#allocation29_spill] sm:$0xff] }
 0x13f   : > { %v1837_v25 = vadd.f32 %v1805_v11, %v1381_v61  ;;  %v1341_v57 = vadd.f32 %v3502_v17, %v1306_v29  ;;  %vm1202_vm2 = vweird.f32 %v3249_v35  ;;  %v1205_v22 = vand.u32 2147483647, %v3190_v21  ;;  %v4044_v29 = vld [vmem:[#allocation40_spill] sm:$0xff] }
 0x140   : > { %v1200_v37 = vadd.f32 %v3249_v35, %v1199_v31  ;;  %v3634_v8 = vmul.f32 %v3627_v0, %v3586_v56  ;;  %v1059_v63 = vsel %vm1056_vm0, %v1058_v30, %v1054_v53  ;;  %v1798_v18 = vadd.f32 %v1766_v12, %v4033_v20  ;;  %vm3637_vm3 = vmor %vm1201_vm1, %vm1202_vm2  ;;  %v4042_v31 = vld [vmem:[#allocation42_spill] sm:$0xff]  ;;  %v4045_v30 = vld [vmem:[#allocation33_spill] sm:$0xff] }
 0x141   : > { %v1207_v11 = vand.u32 2147483648, %v3190_v21  ;;  %1869 = vst [vmem:[%s2978_s10 + $0xb8] sm:$0xff] %v1837_v25  ;;  %v1373_v1 = vmul.f32 %v1341_v57, %v1044_v47  ;;  %v1307_v60 = vmul.f32 %v3480_v49, %v1059_v63  ;;  %vm1206_vm4 = vcmp.eq.f32.partialorder %v1205_v22, 8.507059e+37  ;;  %v4046_v57 = vld [vmem:[#allocation14_spill] sm:$0xff] }
 0x142   : > { %v1204_v3 = vsel %vm3637_vm3, %v3249_v35, %v1200_v37  ;;  %v1273_v14 = vsub.f32 1.0, %v3634_v8  ;;  %v1776_v51 = vmul.f32 %v3528_v26, %v1725_v19  ;;  %v4037_v34 = vsub.f32 1.0, %v4036_v58  ;;  %v1705_v58 = vpop.permute.xlu0 %1704 }
 0x143   : > { %v1208_v59 = vor.u32 1.1754944e-38, %v1207_v11  ;;  %v1829_v6 = vadd.f32 %v1797_v54, %v1373_v1  ;;  %v1342_v2 = vadd.f32 %v3502_v17, %v1307_v60  ;;  %vm1081_vm5 = vweird.f32 %v4039_v4  ;;  %v4047_v1 = vld [vmem:[#allocation24_spill] sm:$0xff] }
 0x144   : > { %v1079_v21 = vmul.f32 %v4038_v44, %v4037_v34  ;;  %vm1082_vm6 = vweird.f32 %v4038_v44  ;;  %v1085_v50 = vand.u32 2147483647, %v4039_v4  ;;  %v1087_v47 = vand.u32 2147483648, %v4039_v4 }
 0x145   : > { %v1209_v28 = vsel %vm1206_vm4, %v1208_v59, %v1204_v3  ;;  %vm3656_vm7 = vmor %vm1081_vm5, %vm1082_vm6  ;;  %1861 = vst [vmem:[%s2978_s10 + $0x78] sm:$0xff] %v1829_v6  ;;  %v1374_v7 = vmul.f32 %v1342_v2, %v1059_v63  ;;  %v1768_v42 = vmul.f32 %v3528_v26, %v1693_v32  ;;  %v4043_v61 = vsub.f32 1.0, %v4042_v31 }
 0x146   : > { %v1080_v35 = vadd.f32 %v4038_v44, %v1079_v21  ;;  %v1317_v12 = vmul.f32 %v3480_v49, %v1209_v28  ;;  %vm1086_vm8 = vcmp.eq.f32.partialorder %v1085_v50, 8.507059e+37  ;;  %v1088_v54 = vor.u32 1.1754944e-38, %v1087_v47  ;;  %v4049_v50 = vld [vmem:[#allocation50_spill] sm:$0xff] }
 0x147   : > { %v1094_v53 = vmul.f32 %v4044_v29, %v4043_v61  ;;  %vm1096_vm9 = vweird.f32 %v4045_v30  ;;  %v1830_v37 = vadd.f32 %v1798_v18, %v1374_v7  ;;  %v1808_v19 = vadd.f32 %v1776_v51, %v4046_v57  ;;  %v1737_v51 = vpop.permute.xlu2 %1736  ;;  %v4051_v61 = vld [vmem:[#allocation21_spill] sm:$0xff] }
 0x148   : > { %v1084_v13 = vsel %vm3656_vm7, %v4038_v44, %v1080_v35  ;;  %v1352_v25 = vadd.f32 %v3502_v17, %v1317_v12  ;;  %vm1097_vm10 = vweird.f32 %v4044_v29  ;;  %v1100_v20 = vand.u32 2147483647, %v4045_v30  ;;  %v4050_v12 = vld [vmem:[#allocation47_spill] sm:$0xff] }
 0x149   : > { %v1095_v22 = vadd.f32 %v4044_v29, %v1094_v53  ;;  %v1089_v63 = vsel %vm1086_vm8, %v1088_v54, %v1084_v13  ;;  %v1102_v33 = vand.u32 2147483648, %v4045_v30  ;;  %1862 = vst [vmem:[%s2978_s10 + $0x80] sm:$0xff] %v1830_v37  ;;  %v1800_v60 = vadd.f32 %v1768_v42, %v4047_v1  ;;  %vm1098_vm11 = vmor %vm1096_vm9, %vm1097_vm10  ;;  %v1709_v42 = vpop.permute.xlu1 %1708  ;;  %v4052_v37 = vld [vmem:[#allocation18_spill] sm:$0xff] }
 0x14a   : > { %v1384_v11 = vmul.f32 %v1352_v25, %v1209_v28  ;;  %v1309_v32 = vmul.f32 %v3480_v49, %v1089_v63  ;;  %v1244_v18 = vmul.f32 %v3463_v5, %v1243_v40  ;;  %vm1101_vm12 = vcmp.eq.f32.partialorder %v1100_v20, 8.507059e+37 }
 0x14b   : > { %v1099_v3 = vsel %vm1098_vm11, %v4044_v29, %v1095_v22  ;;  %v1103_v59 = vor.u32 1.1754944e-38, %v1102_v33  ;;  %vm1246_vm13 = vweird.f32 %v3431_v38  ;;  %v1769_v21 = vmul.f32 %v3528_v26, %v1697_v48  ;;  %v4055_v33 = vld [vmem:[#allocation49_spill] sm:$0xff] }
 0x14c   : > { %v1840_v34 = vadd.f32 %v1808_v19, %v1384_v11  ;;  %v1344_v44 = vadd.f32 %v3502_v17, %v1309_v32  ;;  %v1245_v6 = vadd.f32 %v3463_v5, %v1244_v18  ;;  %vm1247_vm14 = vweird.f32 %v3463_v5  ;;  %v4054_v19 = vld [vmem:[#allocation51_spill] sm:$0xff] }
 0x14d   : > { %v1104_v2 = vsel %vm1101_vm12, %v1103_v59, %v1099_v3  ;;  %v1250_v9 = vand.u32 2147483647, %v3431_v38  ;;  %v1252_v40 = vand.u32 2147483648, %v3431_v38  ;;  %vm1248_vm15 = vmor %vm1246_vm13, %vm1247_vm14  ;;  %v1779_v35 = vmul.f32 %v3528_v26, %v1737_v51  ;;  %v1717_v59 = vpop.permute.xlu0 %1716 }
 0x14e   : > { %1872 = vst [vmem:[%s2978_s10 + $0xd0] sm:$0xff] %v1840_v34  ;;  %v1376_v4 = vmul.f32 %v1344_v44, %v1089_v63  ;;  %v1310_v28 = vmul.f32 %v3480_v49, %v1104_v2  ;;  %v4048_v62 = vsub.f32 1.0, %v3235_v52  ;;  %v1249_v48 = vsel %vm1248_vm15, %v3463_v5, %v1245_v6  ;;  %v4058_v6 = vld [vmem:[#allocation23_spill] sm:$0xff] }
 0x14f   : > { %vm1251_vm0 = vcmp.eq.f32.partialorder %v1250_v9, 8.507059e+37  ;;  %v1253_v7 = vor.u32 1.1754944e-38, %v1252_v40  ;;  %vm1126_vm1 = vweird.f32 %v4050_v12  ;;  %v1801_v29 = vadd.f32 %v1769_v21, %v4051_v61  ;;  %v4056_v21 = vld [vmem:[#allocation26_spill] sm:$0xff]  ;;  %v4061_v61 = vld [vmem:[#allocation27_spill] sm:$0xff] }
 0x150   : > { %v1124_v47 = vmul.f32 %v4049_v50, %v4048_v62  ;;  %v1832_v38 = vadd.f32 %v1800_v60, %v1376_v4  ;;  %v1345_v31 = vadd.f32 %v3502_v17, %v1310_v28  ;;  %vm1127_vm2 = vweird.f32 %v4049_v50  ;;  %v4059_v4 = vld [vmem:[#allocation17_spill] sm:$0xff]  ;;  %v4060_v62 = vld [vmem:[#allocation28_spill] sm:$0xff] }
 0x151   : > { %v1254_v13 = vsel %vm1251_vm0, %v1253_v7, %v1249_v48  ;;  %v1130_v52 = vand.u32 2147483647, %v4050_v12  ;;  %v1132_v54 = vand.u32 2147483648, %v4050_v12  ;;  %v1811_v25 = vadd.f32 %v1779_v35, %v4052_v37  ;;  %vm1128_vm3 = vmor %vm1126_vm1, %vm1127_vm2  ;;  %v4065_v37 = vld [vmem:[#allocation41_spill] sm:$0xff] }
 0x152   : > { %v1125_v53 = vadd.f32 %v4049_v50, %v1124_v47  ;;  %1864 = vst [vmem:[%s2978_s10 + $0x90] sm:$0xff] %v1832_v38  ;;  %v1377_v5 = vmul.f32 %v1345_v31, %v1104_v2  ;;  %v1320_v30 = vmul.f32 %v3480_v49, %v1254_v13  ;;  %v4053_v57 = vsub.f32 1.0, %v3271_v27 }
 0x153   : > { %vm1131_vm4 = vcmp.eq.f32.partialorder %v1130_v52, 8.507059e+37  ;;  %v1133_v20 = vor.u32 1.1754944e-38, %v1132_v54  ;;  %vm1141_vm5 = vweird.f32 %v4055_v33  ;;  %v1771_v1 = vmul.f32 %v3528_v26, %v1705_v58  ;;  %v4064_v52 = vld [vmem:[#allocation45_spill] sm:$0xff] }
 0x154   : > { %v1139_v22 = vmul.f32 %v4054_v19, %v4053_v57  ;;  %v1129_v63 = vsel %vm1128_vm3, %v4049_v50, %v1125_v53  ;;  %v1833_v11 = vadd.f32 %v1801_v29, %v1377_v5  ;;  %v1355_v32 = vadd.f32 %v3502_v17, %v1320_v30  ;;  %v4062_v53 = vld [vmem:[#allocation46_spill] sm:$0xff] }
 0x155   : > { %v1134_v18 = vsel %vm1131_vm4, %v1133_v20, %v1129_v63  ;;  %vm1142_vm6 = vweird.f32 %v4054_v19  ;;  %v1145_v27 = vand.u32 2147483647, %v4055_v33  ;;  %v1147_v3 = vand.u32 2147483648, %v4055_v33 }
 0x156   : > { %v1140_v60 = vadd.f32 %v4054_v19, %v1139_v22  ;;  %1865 = vst [vmem:[%s2978_s10 + $0x98] sm:$0xff] %v1833_v11  ;;  %v1387_v51 = vmul.f32 %v1355_v32, %v1254_v13  ;;  %v1312_v34 = vmul.f32 %v3480_v49, %v1134_v18  ;;  %vm1143_vm7 = vmor %vm1141_vm5, %vm1142_vm6  ;;  %v1772_v44 = vmul.f32 %v3528_v26, %v1709_v42  ;;  %v1721_v42 = vpop.permute.xlu1 %1720 }
 0x157   : > { %v4057_v58 = vsub.f32 1.0, %v4056_v21  ;;  %vm1146_vm8 = vcmp.eq.f32.partialorder %v1145_v27, 8.507059e+37  ;;  %v1148_v40 = vor.u32 1.1754944e-38, %v1147_v3  ;;  %vm1171_vm9 = vweird.f32 %v4059_v4  ;;  %v1729_v3 = vpop.permute.xlu0 %1728 }
 0x158   : > { %v1144_v9 = vsel %vm1143_vm7, %v4054_v19, %v1140_v60  ;;  %v1843_v28 = vadd.f32 %v1811_v25, %v1387_v51  ;;  %v1347_v35 = vadd.f32 %v3502_v17, %v1312_v34  ;;  %v1803_v50 = vadd.f32 %v1771_v1, %v4060_v62  ;;  %v4066_v34 = vld [vmem:[#allocation31_spill] sm:$0xff] }
 0x159   : > { %v1169_v2 = vmul.f32 %v4058_v6, %v4057_v58  ;;  %v1149_v48 = vsel %vm1146_vm8, %v1148_v40, %v1144_v9  ;;  %vm1172_vm10 = vweird.f32 %v4058_v6  ;;  %v1175_v7 = vand.u32 2147483647, %v4059_v4  ;;  %v4067_v9 = vld [vmem:[#allocation30_spill] sm:$0xff] }
 0x15a   : > { %v1177_v12 = vand.u32 2147483648, %v4059_v4  ;;  %1875 = vst [vmem:[%s2978_s10 + $0xe8] sm:$0xff] %v1843_v28  ;;  %v1379_v38 = vmul.f32 %v1347_v35, %v1134_v18  ;;  %v1313_v31 = vmul.f32 %v3480_v49, %v1149_v48  ;;  %v1804_v29 = vadd.f32 %v1772_v44, %v4061_v61  ;;  %vm1173_vm11 = vmor %vm1171_vm9, %vm1172_vm10 }
 0x15b   : > { %v1170_v47 = vadd.f32 %v4058_v6, %v1169_v2  ;;  %v4063_v13 = vsub.f32 1.0, %v4062_v53  ;;  %vm1176_vm12 = vcmp.eq.f32.partialorder %v1175_v7, 8.507059e+37  ;;  %vm1186_vm13 = vweird.f32 %v4065_v37  ;;  %v4068_v53 = vld [vmem:[#allocation43_spill] sm:$0xff] }
 0x15c   : > { %v1178_v30 = vor.u32 1.1754944e-38, %v1177_v12  ;;  %v1835_v25 = vadd.f32 %v1803_v50, %v1379_v38  ;;  %v1348_v57 = vadd.f32 %v3502_v17, %v1313_v31  ;;  %v1774_v19 = vmul.f32 %v3528_v26, %v1717_v59 }
 0x15d   : > { %v1184_v54 = vmul.f32 %v4064_v52, %v4063_v13  ;;  %v1174_v5 = vsel %vm1173_vm11, %v4058_v6, %v1170_v47  ;;  %vm1187_vm14 = vweird.f32 %v4064_v52  ;;  %v1190_v20 = vand.u32 2147483647, %v4065_v37 }
 0x15e   : > { %v1179_v63 = vsel %vm1176_vm12, %v1178_v30, %v1174_v5  ;;  %v1192_v33 = vand.u32 2147483648, %v4065_v37  ;;  %1867 = vst [vmem:[%s2978_s10 + $0xa8] sm:$0xff] %v1835_v25  ;;  %v1380_v11 = vmul.f32 %v1348_v57, %v1149_v48  ;;  %vm1188_vm15 = vmor %vm1186_vm13, %vm1187_vm14  ;;  %v1775_v1 = vmul.f32 %v3528_v26, %v1721_v42  ;;  %v1733_v62 = vpop.permute.xlu1 %1732  ;;  %v4069_v37 = vld [vmem:[#allocation36_spill] sm:$0xff] }
 0x15f   : > { %v1185_v22 = vadd.f32 %v4064_v52, %v1184_v54  ;;  %v1315_v32 = vmul.f32 %v3480_v49, %v1179_v63  ;;  %v1214_v60 = vmul.f32 %v3279_v43, %v1213_v24  ;;  %vm1191_vm0 = vcmp.eq.f32.partialorder %v1190_v20, 8.507059e+37  ;;  %v1741_v5 = vpop.permute.xlu0 %1740 }
 0x160   : > { %v1193_v27 = vor.u32 1.1754944e-38, %v1192_v33  ;;  %vm1216_vm1 = vweird.f32 %v3218_v15  ;;  %v1836_v59 = vadd.f32 %v1804_v29, %v1380_v11  ;;  %v1806_v44 = vadd.f32 %v1774_v19, %v4066_v34 }
 0x161   : > { %v1189_v18 = vsel %vm1188_vm15, %v4064_v52, %v1185_v22  ;;  %v1350_v51 = vadd.f32 %v3502_v17, %v1315_v32  ;;  %v1215_v21 = vadd.f32 %v3279_v43, %v1214_v60  ;;  %vm1217_vm2 = vweird.f32 %v3279_v43 }
 0x162   : > { %v1194_v58 = vsel %vm1191_vm0, %v1193_v27, %v1189_v18  ;;  %v1220_v23 = vand.u32 2147483647, %v3218_v15  ;;  %v1222_v24 = vand.u32 2147483648, %v3218_v15  ;;  %1868 = vst [vmem:[%s2978_s10 + $0xb0] sm:$0xff] %v1836_v59  ;;  %v1807_v40 = vadd.f32 %v1775_v1, %v4067_v9  ;;  %vm1218_vm3 = vmor %vm1216_vm1, %vm1217_vm2  ;;  %v4070_v1 = vld [vmem:[#allocation48_spill] sm:$0xff] }
 0x163   : > { %v1382_v6 = vmul.f32 %v1350_v51, %v1179_v63  ;;  %v1316_v2 = vmul.f32 %v3480_v49, %v1194_v58  ;;  %v1229_v4 = vmul.f32 %v3392_v45, %v1228_v39  ;;  %v1219_v28 = vsel %vm1218_vm3, %v3279_v43, %v1215_v21 }
 0x164   : > { %vm1221_vm4 = vcmp.eq.f32.partialorder %v1220_v23, 8.507059e+37  ;;  %v1223_v35 = vor.u32 1.1754944e-38, %v1222_v24  ;;  %vm1231_vm5 = vweird.f32 %v3344_v46  ;;  %v1777_v47 = vmul.f32 %v3528_v26, %v1729_v3 }
 0x165   : > { %v1838_v15 = vadd.f32 %v1806_v44, %v1382_v6  ;;  %v1351_v50 = vadd.f32 %v3502_v17, %v1316_v2  ;;  %v1230_v48 = vadd.f32 %v3392_v45, %v1229_v4  ;;  %vm1232_vm6 = vweird.f32 %v3392_v45 }
 0x166   : > { %v1224_v7 = vsel %vm1221_vm4, %v1223_v35, %v1219_v28  ;;  %v1235_v41 = vand.u32 2147483647, %v3344_v46  ;;  %v1237_v39 = vand.u32 2147483648, %v3344_v46  ;;  %vm1233_vm7 = vmor %vm1231_vm5, %vm1232_vm6  ;;  %v1778_v42 = vmul.f32 %v3528_v26, %v1733_v62  ;;  %v1745_v32 = vpop.permute.xlu1 %1744 }
 0x167   : > { %1870 = vst [vmem:[%s2978_s10 + $0xc0] sm:$0xff] %v1838_v15  ;;  %v1383_v43 = vmul.f32 %v1351_v50, %v1194_v58  ;;  %v1318_v12 = vmul.f32 %v3480_v49, %v1224_v7  ;;  %v1259_v38 = vmul.f32 %v3551_v16, %v1258_v55  ;;  %v1234_v31 = vsel %vm1233_vm7, %v3392_v45, %v1230_v48 }
 0x168   : > { %vm1236_vm8 = vcmp.eq.f32.partialorder %v1235_v41, 8.507059e+37  ;;  %v1238_v61 = vor.u32 1.1754944e-38, %v1237_v39  ;;  %vm1261_vm9 = vweird.f32 %v3507_v10  ;;  %v1809_v13 = vadd.f32 %v1777_v47, %v4068_v53 }
 0x169   : > { %v1839_v29 = vadd.f32 %v1807_v40, %v1383_v43  ;;  %v1353_v46 = vadd.f32 %v3502_v17, %v1318_v12  ;;  %v1260_v52 = vadd.f32 %v3551_v16, %v1259_v38  ;;  %vm1262_vm10 = vweird.f32 %v3551_v16 }
 0x16a   : > { %v1239_v54 = vsel %vm1236_vm8, %v1238_v61, %v1234_v31  ;;  %v1265_v36 = vand.u32 2147483647, %v3507_v10  ;;  %v1267_v55 = vand.u32 2147483648, %v3507_v10  ;;  %v1810_v25 = vadd.f32 %v1778_v42, %v4069_v37  ;;  %vm1263_vm11 = vmor %vm1261_vm9, %vm1262_vm10 }
 0x16b   : > { %1871 = vst [vmem:[%s2978_s10 + $0xc8] sm:$0xff] %v1839_v29  ;;  %v1385_v45 = vmul.f32 %v1353_v46, %v1224_v7  ;;  %v1319_v30 = vmul.f32 %v3480_v49, %v1239_v54  ;;  %v1274_v57 = vmul.f32 %v3627_v0, %v1273_v14  ;;  %v1264_v19 = vsel %vm1263_vm11, %v3551_v16, %v1260_v52  ;;  %v2288_v14 = vld [vmem:[%s3861_s6] ss:$0 sm:$0xff] }
 0x16c   : > { %vm1266_vm12 = vcmp.eq.f32.partialorder %v1265_v36, 8.507059e+37  ;;  %v1268_v22 = vor.u32 1.1754944e-38, %v1267_v55  ;;  %vm1276_vm13 = vweird.f32 %v3586_v56  ;;  %v1780_v20 = vmul.f32 %v3528_v26, %v1741_v5 }
 0x16d   : > { %v1841_v10 = vadd.f32 %v1809_v13, %v1385_v45  ;;  %v1354_v63 = vadd.f32 %v3502_v17, %v1319_v30  ;;  %v1275_v33 = vadd.f32 %v3627_v0, %v1274_v57  ;;  %vm1277_vm14 = vweird.f32 %v3627_v0 }
 0x16e   : > { %v1269_v11 = vsel %vm1266_vm12, %v1268_v22, %v1264_v19  ;;  %v1280_v8 = vand.u32 2147483647, %v3586_v56  ;;  %v1282_v16 = vand.u32 2147483648, %v3586_v56  ;;  %v1616_v60 = vmul.f32 %v2288_v14, %v4070_v1  ;;  %vm1278_vm15 = vmor %vm1276_vm13, %vm1277_vm14  ;;  %v4071_v56 = vld [vmem:[#allocation44_spill] sm:$0xff] }
 0x16f   : > { %1873 = vst [vmem:[%s2978_s10 + $0xd8] sm:$0xff] %v1841_v10  ;;  %v1386_v18 = vmul.f32 %v1354_v63, %v1239_v54  ;;  %v1321_v27 = vmul.f32 %v3480_v49, %v1269_v11  ;;  %v1279_v3 = vsel %vm1278_vm15, %v3627_v0, %v1275_v33  ;;  %v1781_v21 = vmul.f32 %v3528_v26, %v1745_v32 }
 0x170   : > { %vm1281_vm0 = vcmp.eq.f32.partialorder %v1280_v8, 8.507059e+37  ;;  %v1283_v59 = vor.u32 1.1754944e-38, %v1282_v16  ;;  %v1812_v44 = vadd.f32 %v1780_v20, %v1616_v60  ;;  %v1617_v23 = vmul.f32 %v2288_v14, %v4071_v56 }
 0x171   : > { %v1842_v51 = vadd.f32 %v1810_v25, %v1386_v18  ;;  %v1356_v34 = vadd.f32 %v3502_v17, %v1321_v27 }
 0x172   : > { %v1284_v58 = vsel %vm1281_vm0, %v1283_v59, %v1279_v3  ;;  %v1813_v9 = vadd.f32 %v1781_v21, %v1617_v23 }
 0x173   : > { %1874 = vst [vmem:[%s2978_s10 + $0xe0] sm:$0xff] %v1842_v51  ;;  %v1388_v0 = vmul.f32 %v1356_v34, %v1269_v11  ;;  %v1322_v24 = vmul.f32 %v3480_v49, %v1284_v58 }
 0x175   : > { %v1844_v6 = vadd.f32 %v1812_v44, %v1388_v0  ;;  %v1357_v2 = vadd.f32 %v3502_v17, %v1322_v24 }
 0x177   : > { %1876 = vst [vmem:[%s2978_s10 + $0xf0] sm:$0xff] %v1844_v6  ;;  %v1389_v26 = vmul.f32 %v1357_v2, %v1284_v58 }
 0x179   : > { %v1845_v40 = vadd.f32 %v1813_v9, %v1389_v26 }
 0x17b   : > { %1877 = vst [vmem:[%s2978_s10 + $0xf8] sm:$0xff] %v1845_v40 }
 0x17c   : > { %2328 = shalt.err (!%p2325_p9)
}
 0x17d   : > { %s2370_s28 = smov 128   ;;  %s2371_s10 = smov 8  }
 0x17e   : > { %2101 = dma.vmem_to_hbm [thread:$0]  (%p2463_p5), %s1892_s0, 4096, %s1894_s25, %s1879_s26, %s2370_s28, %s2370_s28, %s2371_s10  }
 0x17f PF: > { %p2107_p10 = scmp.ge.s32.totalorder %s2365_s16, 2  ;;  %s1908_s29 = sand.u32 1, %s2353_s13  }
 0x180   : > { %s1909_s24 = scalar_lea.sflag [#allocation5], %s1908_s29 }
 0x181   : > { %p2104_p11 = pnand %p2107_p10, %p2467_p6 }
 0x183   : > { %p2105_p12 = pneg %p2104_p11 }
 0x185   : > { %2348 = dma.done.wait (%p2105_p12), %s1909_s24, 4096  }
 0x186   : > { %2350 = vsyncadd (%p2105_p12), %s1909_s24, 4294963200  ;;  %p27_p13 = scmp.ge.s32.totalorder %s2450_s18, 6   ;;  %s4072_s13 = smov %s2357_s14 }
 0x187   : > { %s4073_s14 = smov %s2361_s15  ;;  %s4074_s15 = smov %s2461_s21 }
 0x188   : > { %s4075_s16 = smov %s2450_s18  ;;  %29 = sbr.rel (!%p27_p13) target bundleno = 9 (0x9), region = 102 }
 0x18d   :  { %1915 = vsyncpa [#allocation5], 1 }
 0x18e   :  { %1917 = vsyncpa [#allocation5 + $0x1], 1 }

</bundles_post_ra>
